<compile_context>
chip_gen: v6e
topology: v6e:2x2x1
jax: 0.10.0
libtpu: 0.0.40
codegen_flags: <defaults>
</compile_context>

<pallas_src>
import functools
import math

import jax
import jax.numpy as jnp
import numpy as np
from jax.experimental import pallas as pl
from jax.experimental.pallas import tpu as pltpu

# ---- hyperparameters (the PyTorch module references these as globals) ----
d_model = 32
d_k = 8
d_v = 8
n_heads = 4
d_ff = 64
LN_EPS = 1e-5
MASK_NEG = -1e9


def _gelu(x):
    # exact erf-based gelu, matching the reference `gelu`
    return x * 0.5 * (1.0 + jax.lax.erf(x / math.sqrt(2.0)))


def _rows_to_lanes(t):
    """(Bt, R, C) -> (Bt, R*C): flatten the last two dims into the lane dimension using
    static sublane slices + lane-concat so the final store is lane-dense (multiple of 128
    lanes -> unmasked vst)."""
    Bt, R, C = t.shape
    return jnp.concatenate([t[:, r, :] for r in range(R)], axis=-1)


def encoder_layer_kernel(x_ref, mb_ref,
                         wqkv_ref, bqkv_ref, wfc_ref, w1_ref, b1_ref, w2_ref,
                         vec_ref,
                         out_ref, attn_ref, *, approx_recip=False):
    Bt, S, _ = x_ref.shape
    rows = Bt * S
    cd = wqkv_ref.dtype                      # matmul operand dtype (f32 or bf16)
    inv_sqrt_dk = 1.0 / math.sqrt(d_k)

    x = x_ref[...].reshape(rows, d_model)    # (rows, 32), f32
    mb = mb_ref[...]                         # (Bt, S, S) additive mask bias (0 / -1e9)

    # ---- fused QKV projection: single (rows, 32) @ (32, 128) matmul (N padded to 128) ----
    qkv = jnp.dot(x.astype(cd), wqkv_ref[...],
                  preferred_element_type=jnp.float32) + bqkv_ref[0]      # (rows, 128)
    qkvc = qkv.astype(cd)                    # cast ONCE; all head slices inherit it

    Hdk = n_heads * d_k

    # ---- stack heads head-major into the einsum batch dim: n = H*Bt -------------------
    def head_stack(base, d):
        return jnp.concatenate(
            [qkvc[:, base + h * d: base + (h + 1) * d].reshape(Bt, S, d)
             for h in range(n_heads)], axis=0)                           # (H*Bt, S, d)

    q_all = head_stack(0, d_k)
    k_all = head_stack(Hdk, d_k)
    v_all = head_stack(2 * Hdk, d_v)

    # ---- single scores einsum, single mask add (broadcast over H), single softmax ----
    scores = jnp.einsum('nqd,nkd->nqk', q_all, k_all,
                        preferred_element_type=jnp.float32)              # (H*Bt, S, S) f32
    # additive mask bias == masked_fill for any row with >=1 unmasked key
    # (a fully masked row would differ from torch's masked_fill+softmax uniform output)
    scores = scores.reshape(n_heads, Bt, S, S) * inv_sqrt_dk + mb[None]  # (H, Bt, S, S)

    s_max = jnp.max(scores, axis=-1, keepdims=True)
    e = jnp.exp(scores - s_max)
    denom = jnp.sum(e, axis=-1, keepdims=True)
    if approx_recip:
        attn = e * pl.reciprocal(denom, approx=True)   # EUP slot (bf16 production mode)
    else:
        attn = e / denom                               # exact (f32 demo / reference check)

    # ---- single context einsum over all heads ----
    ctx = jnp.einsum('nqk,nkd->nqd',
                     attn.reshape(n_heads * Bt, S, S).astype(cd), v_all,
                     preferred_element_type=jnp.float32)                 # (H*Bt, S, d_v)

    # heads back into lanes for the fused output projection: (rows, H*d_v)
    ctx_rows = jnp.concatenate(
        [ctx[h * Bt:(h + 1) * Bt].reshape(rows, d_v) for h in range(n_heads)],
        axis=-1)                                                         # (rows, 32)

    proj = jnp.dot(ctx_rows.astype(cd), wfc_ref[...],
                   preferred_element_type=jnp.float32) + vec_ref[0]      # + fc bias

    # ---- residual + LayerNorm (f32 elementwise) ----
    y = proj + x
    mu = jnp.mean(y, axis=-1, keepdims=True)
    var = jnp.mean((y - mu) * (y - mu), axis=-1, keepdims=True)
    yn = (y - mu) * jax.lax.rsqrt(var + LN_EPS) * vec_ref[1] + vec_ref[2]

    # ---- position-wise FFN ----
    h1 = jnp.dot(yn.astype(cd), w1_ref[...],
                 preferred_element_type=jnp.float32) + b1_ref[0]
    g = _gelu(h1)
    out = jnp.dot(g.astype(cd), w2_ref[...],
                  preferred_element_type=jnp.float32) + vec_ref[3]       # (rows, 32)

    # ---- lane-dense stores: flat (Bt, 256) slabs, reshaped/transposed in the wrapper ----
    out_ref[...] = _rows_to_lanes(out.reshape(Bt, S, d_model))           # (Bt, S*d_model)

    # attn: heads along lanes first (4 lane-concats), then rows->lanes (8 concats of 32)
    attn_bs = jnp.concatenate([attn[h] for h in range(n_heads)], axis=-1)  # (Bt, S, H*S)
    attn_ref[...] = _rows_to_lanes(attn_bs)                              # (Bt, H*S*S)


# ------------------------- batch-block / VMEM planning -------------------------
def _vmem_limit_bytes():
    """Scoped-VMEM limit to request: ~75% of physical per-core VMEM, conservative 64 MiB
    default (v7x per-TC) when the query is unavailable."""
    cap = 64 * 1024 * 1024
    try:
        cap = int(pltpu.get_tpu_info().vmem_capacity_bytes)
    except Exception:
        pass
    return int(min(max(cap * 3 // 4, 32 * 1024 * 1024), 128 * 1024 * 1024))


def _prefer_two_grid_steps():
    """True on v7x-like devices (2 TensorCores/chip): keep >=2 grid steps so
    dimension_semantics=('parallel',) can shard across both cores."""
    try:
        kind = jax.devices()[0].device_kind.lower()
    except Exception:
        return False
    return ("v7" in kind) or ("7x" in kind)


def _plan_batch_blocking(B, vmem_limit):
    """Return (Bt, B_pad): batch elements per grid step and padded batch size.

    Per batch element the in-kernel footprint (double-buffered I/O slabs + f32
    intermediates) is ~30 KB; we budget a conservative 64 KB/element against 40% of the
    scoped-VMEM limit so the step is as fat as safely possible (step overhead ~0.35 us)."""
    bytes_per_elem = 64 * 1024
    bt_cap = max(8, (int(0.4 * vmem_limit) // bytes_per_elem) // 8 * 8)
    bt_cap = min(bt_cap, 2048)

    if B <= bt_cap:
        if _prefer_two_grid_steps() and B >= 16:
            bt = ((B + 1) // 2 + 7) // 8 * 8        # ~half of B, multiple of 8 -> 2 steps
        else:
            bt = B                                   # single fattest step (v5e / v6e)
            return bt, B
    else:
        bt = bt_cap
    b_pad = ((B + bt - 1) // bt) * bt
    return bt, b_pad


def encoder_layer(x, mask, params, *, matmul_dtype=jnp.float32):
    B, S, dm = x.shape
    assert dm == d_model
    (wq, bq, wk, bk, wv, bv, wfc, bfc, gamma, beta, w1, b1, w2, b2) = params

    # ---- host-side packing: fuse QKV weights (pad N 96->128 lanes), pre-transpose so all
    #      in-kernel matmuls are A @ W ----
    wqkv_t = jnp.concatenate([wq, wk, wv], axis=0).T                            # (32, 96)
    wqkv_pad = jnp.concatenate(
        [wqkv_t, jnp.zeros((d_model, 128 - 3 * n_heads * d_k), wqkv_t.dtype)],
        axis=1).astype(matmul_dtype)                                            # (32, 128)
    bqkv_pad = jnp.concatenate(
        [bq, bk, bv, jnp.zeros((1, 128 - 3 * n_heads * d_k), bq.dtype)],
        axis=1).astype(jnp.float32)                                             # (1, 128)
    wfc_t = wfc.T.astype(matmul_dtype)                                          # (32, 32)
    w1_t = w1.T.astype(matmul_dtype)                                            # (32, 64)
    w2_t = w2.T.astype(matmul_dtype)                                            # (64, 32)
    vec = jnp.concatenate([bfc, gamma, beta, b2], axis=0).astype(jnp.float32)   # (4, 32)
    b1f = b1.astype(jnp.float32)                                                # (1, 64)

    # additive mask bias replaces the in-kernel compare+select
    # (kept dense (B,S,S) to preserve the module's arbitrary-mask semantics; a key-padding
    #  (B,1,S) form would cut this DMA 8x when the mask is known to be padding-only)
    mask_bias = mask.astype(jnp.float32) * MASK_NEG                             # (B, S, S)

    vmem_limit = _vmem_limit_bytes()
    Bt, B_pad = _plan_batch_blocking(B, vmem_limit)
    if B_pad > B:
        pad = B_pad - B
        x_in = jnp.pad(x, ((0, pad), (0, 0), (0, 0)))
        mb_in = jnp.pad(mask_bias, ((0, pad), (0, 0), (0, 0)))
    else:
        x_in, mb_in = x, mask_bias
    grid = (B_pad // Bt,)

    packed = (wqkv_pad, bqkv_pad, wfc_t, w1_t, b1f, w2_t, vec)

    def full_spec(a):
        nd = a.ndim
        return pl.BlockSpec(a.shape, lambda b, _nd=nd: (0,) * _nd)

    in_specs = [
        pl.BlockSpec((Bt, S, d_model), lambda b: (b, 0, 0)),   # enc_inputs
        pl.BlockSpec((Bt, S, S), lambda b: (b, 0, 0)),         # additive mask bias
    ] + [full_spec(a) for a in packed]

    out_specs = [
        pl.BlockSpec((Bt, S * d_model), lambda b: (b, 0)),         # enc_out slab (lane-dense)
        pl.BlockSpec((Bt, n_heads * S * S), lambda b: (b, 0)),     # attn slab   (lane-dense)
    ]
    out_shape = (
        jax.ShapeDtypeStruct((B_pad, S * d_model), jnp.float32),
        jax.ShapeDtypeStruct((B_pad, n_heads * S * S), jnp.float32),
    )

    flops = 2 * B * S * (d_model * 3 * n_heads * d_k      # fused QKV projection
                         + n_heads * S * d_k               # scores
                         + n_heads * S * d_v               # attn @ V
                         + n_heads * d_v * d_model         # output projection
                         + 2 * d_model * d_ff)             # FFN
    transcendentals = B * n_heads * S * S + B * S * d_ff + B * S
    bytes_accessed = 4 * (int(x.size) + int(mask_bias.size)
                          + sum(int(a.size) for a in packed)
                          + B * S * d_model + B * n_heads * S * S)

    kernel = functools.partial(encoder_layer_kernel,
                               approx_recip=(matmul_dtype == jnp.bfloat16))

    out_flat, attn_flat = pl.pallas_call(
        kernel,
        out_shape=out_shape,
        grid=grid,
        in_specs=in_specs,
        out_specs=out_specs,
        compiler_params=pltpu.CompilerParams(
            dimension_semantics=("parallel",),
            vmem_limit_bytes=vmem_limit),
        cost_estimate=pl.CostEstimate(flops=int(flops),
                                      transcendentals=int(transcendentals),
                                      bytes_accessed=int(bytes_accessed)),
    )(x_in, mb_in, *packed)

    # free metadata reshapes / tiny HBM transpose in the wrapper (outside the kernel)
    enc_out = out_flat[:B].reshape(B, S, d_model)
    attn = attn_flat[:B].reshape(B, S, n_heads, S).transpose(0, 2, 1, 3)   # (B, H, S, S)
    return enc_out, attn


# ------------------------- pure-JAX reference -------------------------
def encoder_layer_ref(x, mask, params):
    (wq, bq, wk, bk, wv, bv, wfc, bfc, gamma, beta, w1, b1, w2, b2) = params
    B, S, _ = x.shape
    q = (x @ wq.T + bq[0]).reshape(B, S, n_heads, d_k).transpose(0, 2, 1, 3)
    k = (x @ wk.T + bk[0]).reshape(B, S, n_heads, d_k).transpose(0, 2, 1, 3)
    v = (x @ wv.T + bv[0]).reshape(B, S, n_heads, d_v).transpose(0, 2, 1, 3)
    scores = jnp.einsum("bhqd,bhkd->bhqk", q, k) / np.sqrt(d_k)
    scores = jnp.where(mask[:, None, :, :] > 0.5, -1e9, scores)
    attn = jax.nn.softmax(scores, axis=-1)
    ctx = jnp.einsum("bhqk,bhkd->bhqd", attn, v)
    ctx = ctx.transpose(0, 2, 1, 3).reshape(B, S, n_heads * d_v)
    out = ctx @ wfc.T + bfc[0]
    y = out + x
    mu = y.mean(-1, keepdims=True)
    var = ((y - mu) ** 2).mean(-1, keepdims=True)
    yn = (y - mu) / jnp.sqrt(var + LN_EPS) * gamma[0] + beta[0]
    h1 = yn @ w1.T + b1[0]
    g = h1 * 0.5 * (1.0 + jax.lax.erf(h1 / math.sqrt(2.0)))
    return g @ w2.T + b2[0], attn


if __name__ == "__main__":
    B, S = 2, 8
    key = jax.random.PRNGKey(0)
    keys = jax.random.split(key, 12)

    x = jax.random.normal(keys[0], (B, S, d_model), jnp.float32)

    # padding-style mask: last two key positions are masked out for every query
    mask = jnp.zeros((B, S, S), jnp.float32).at[:, :, -2:].set(1.0)

    def lin(kw, kb, out_f, in_f):
        bound = 1.0 / math.sqrt(in_f)
        w = jax.random.uniform(kw, (out_f, in_f), jnp.float32, -bound, bound)
        b = jax.random.uniform(kb, (1, out_f), jnp.float32, -bound, bound)
        return w, b

    wq, bq = lin(keys[1], keys[2], n_heads * d_k, d_model)
    wk, bk = lin(keys[3], keys[4], n_heads * d_k, d_model)
    wv, bv = lin(keys[5], keys[6], n_heads * d_v, d_model)
    wfc, bfc = lin(keys[7], keys[8], d_model, n_heads * d_v)
    gamma = jnp.ones((1, d_model), jnp.float32)
    beta = jnp.zeros((1, d_model), jnp.float32)
    w1, b1 = lin(keys[9], keys[10], d_ff, d_model)
    w2, b2 = lin(keys[11], keys[0], d_model, d_ff)

    params = (wq, bq, wk, bk, wv, bv, wfc, bfc, gamma, beta, w1, b1, w2, b2)

    # f32 matmuls in the demo so the 1e-4 check against the PyTorch-equivalent reference
    # holds; pass matmul_dtype=jnp.bfloat16 in production for MXU throughput (widen the
    # tolerance to ~1e-2 and validate).
    enc_out, attn = encoder_layer(x, mask, params)
    jax.block_until_ready(enc_out)
    jax.block_until_ready(attn)

    ref_out, ref_attn = encoder_layer_ref(x, mask, params)
    np.testing.assert_allclose(np.asarray(enc_out), np.asarray(ref_out), rtol=1e-4, atol=1e-4)
    np.testing.assert_allclose(np.asarray(attn), np.asarray(ref_attn), rtol=1e-4, atol=1e-4)

    print("KERNEL_OK")
</pallas_src>

<mosaic_0001>
module attributes {stable_mosaic.version = 11 : i64} {
  func.func @encoder_layer_kernel(%arg0: i32, %arg1: memref<2x8x32xf32, #tpu.memory_space<vmem>>, %arg2: memref<2x8x8xf32, #tpu.memory_space<vmem>>, %arg3: memref<32x128xf32, #tpu.memory_space<vmem>>, %arg4: memref<1x128xf32, #tpu.memory_space<vmem>>, %arg5: memref<32x32xf32, #tpu.memory_space<vmem>>, %arg6: memref<32x64xf32, #tpu.memory_space<vmem>>, %arg7: memref<1x64xf32, #tpu.memory_space<vmem>>, %arg8: memref<64x32xf32, #tpu.memory_space<vmem>>, %arg9: memref<4x32xf32, #tpu.memory_space<vmem>>, %arg10: memref<2x256xf32, #tpu.memory_space<vmem>>, %arg11: memref<2x256xf32, #tpu.memory_space<vmem>>) attributes {dimension_semantics = [#tpu.dimension_semantics<parallel>], iteration_bounds = array<i64: 1>, scalar_prefetch = 0 : i64, scratch_operands = 0 : i64, tpu.core_type = #tpu.core_type<tc>, window_params = [{transform_indices = @transform_0, window_bounds = array<i64: 2, 8, 32>}, {transform_indices = @transform_1, window_bounds = array<i64: 2, 8, 8>}, {pipeline_mode = #tpu.pipeline_mode<synchronous>, transform_indices = @transform_2, window_bounds = array<i64: 32, 128>}, {pipeline_mode = #tpu.pipeline_mode<synchronous>, transform_indices = @transform_3, window_bounds = array<i64: 1, 128>}, {pipeline_mode = #tpu.pipeline_mode<synchronous>, transform_indices = @transform_4, window_bounds = array<i64: 32, 32>}, {pipeline_mode = #tpu.pipeline_mode<synchronous>, transform_indices = @transform_5, window_bounds = array<i64: 32, 64>}, {pipeline_mode = #tpu.pipeline_mode<synchronous>, transform_indices = @transform_6, window_bounds = array<i64: 1, 64>}, {pipeline_mode = #tpu.pipeline_mode<synchronous>, transform_indices = @transform_7, window_bounds = array<i64: 64, 32>}, {pipeline_mode = #tpu.pipeline_mode<synchronous>, transform_indices = @transform_8, window_bounds = array<i64: 4, 32>}, {transform_indices = @transform_9, window_bounds = array<i64: 2, 256>}, {transform_indices = @transform_10, window_bounds = array<i64: 2, 256>}]} {
    %c0 = arith.constant 0 : index
    %c0_0 = arith.constant 0 : index
    %c0_1 = arith.constant 0 : index
    %0 = vector.load %arg1[%c0, %c0_0, %c0_1] : memref<2x8x32xf32, #tpu.memory_space<vmem>>, vector<2x8x32xf32>
    %1 = vector.shape_cast %0 : vector<2x8x32xf32> to vector<16x32xf32>
    %c0_2 = arith.constant 0 : index
    %c0_3 = arith.constant 0 : index
    %c0_4 = arith.constant 0 : index
    %2 = vector.load %arg2[%c0_2, %c0_3, %c0_4] : memref<2x8x8xf32, #tpu.memory_space<vmem>>, vector<2x8x8xf32>
    %c0_5 = arith.constant 0 : index
    %c0_6 = arith.constant 0 : index
    %3 = vector.load %arg3[%c0_5, %c0_6] : memref<32x128xf32, #tpu.memory_space<vmem>>, vector<32x128xf32>
    %cst = arith.constant dense<0.000000e+00> : vector<16x128xf32>
    %4 = tpu.matmul %1, %3, %cst {dimension_numbers = #tpu.dot_dimension_numbers<[1], [0], [0], [1], [0, 0, 1, 1], [], []>} : vector<16x32xf32>, vector<32x128xf32>, vector<16x128xf32> -> vector<16x128xf32>
    %c0_7 = arith.constant 0 : index
    %c0_8 = arith.constant 0 : index
    %5 = vector.load %arg4[%c0_7, %c0_8] : memref<1x128xf32, #tpu.memory_space<vmem>>, vector<1x128xf32>
    %6 = vector.shape_cast %5 : vector<1x128xf32> to vector<128xf32>
    %7 = vector.shape_cast %6 : vector<128xf32> to vector<1x128xf32>
    %8 = vector.broadcast %7 : vector<1x128xf32> to vector<16x128xf32>
    %9 = arith.addf %4, %8 : vector<16x128xf32>
    %10 = vector.extract_strided_slice %9 {offsets = [0, 0], sizes = [16, 8], strides = [1, 1]} : vector<16x128xf32> to vector<16x8xf32>
    %11 = vector.shape_cast %10 : vector<16x8xf32> to vector<2x8x8xf32>
    %12 = vector.extract_strided_slice %9 {offsets = [0, 8], sizes = [16, 8], strides = [1, 1]} : vector<16x128xf32> to vector<16x8xf32>
    %13 = vector.shape_cast %12 : vector<16x8xf32> to vector<2x8x8xf32>
    %14 = vector.extract_strided_slice %9 {offsets = [0, 16], sizes = [16, 8], strides = [1, 1]} : vector<16x128xf32> to vector<16x8xf32>
    %15 = vector.shape_cast %14 : vector<16x8xf32> to vector<2x8x8xf32>
    %16 = vector.extract_strided_slice %9 {offsets = [0, 24], sizes = [16, 8], strides = [1, 1]} : vector<16x128xf32> to vector<16x8xf32>
    %17 = vector.shape_cast %16 : vector<16x8xf32> to vector<2x8x8xf32>
    %18 = tpu.concatenate %11, %13, %15, %17 in 0 : vector<2x8x8xf32>, vector<2x8x8xf32>, vector<2x8x8xf32>, vector<2x8x8xf32> -> vector<8x8x8xf32>
    %19 = vector.extract_strided_slice %9 {offsets = [0, 32], sizes = [16, 8], strides = [1, 1]} : vector<16x128xf32> to vector<16x8xf32>
    %20 = vector.shape_cast %19 : vector<16x8xf32> to vector<2x8x8xf32>
    %21 = vector.extract_strided_slice %9 {offsets = [0, 40], sizes = [16, 8], strides = [1, 1]} : vector<16x128xf32> to vector<16x8xf32>
    %22 = vector.shape_cast %21 : vector<16x8xf32> to vector<2x8x8xf32>
    %23 = vector.extract_strided_slice %9 {offsets = [0, 48], sizes = [16, 8], strides = [1, 1]} : vector<16x128xf32> to vector<16x8xf32>
    %24 = vector.shape_cast %23 : vector<16x8xf32> to vector<2x8x8xf32>
    %25 = vector.extract_strided_slice %9 {offsets = [0, 56], sizes = [16, 8], strides = [1, 1]} : vector<16x128xf32> to vector<16x8xf32>
    %26 = vector.shape_cast %25 : vector<16x8xf32> to vector<2x8x8xf32>
    %27 = tpu.concatenate %20, %22, %24, %26 in 0 : vector<2x8x8xf32>, vector<2x8x8xf32>, vector<2x8x8xf32>, vector<2x8x8xf32> -> vector<8x8x8xf32>
    %28 = vector.extract_strided_slice %9 {offsets = [0, 64], sizes = [16, 8], strides = [1, 1]} : vector<16x128xf32> to vector<16x8xf32>
    %29 = vector.shape_cast %28 : vector<16x8xf32> to vector<2x8x8xf32>
    %30 = vector.extract_strided_slice %9 {offsets = [0, 72], sizes = [16, 8], strides = [1, 1]} : vector<16x128xf32> to vector<16x8xf32>
    %31 = vector.shape_cast %30 : vector<16x8xf32> to vector<2x8x8xf32>
    %32 = vector.extract_strided_slice %9 {offsets = [0, 80], sizes = [16, 8], strides = [1, 1]} : vector<16x128xf32> to vector<16x8xf32>
    %33 = vector.shape_cast %32 : vector<16x8xf32> to vector<2x8x8xf32>
    %34 = vector.extract_strided_slice %9 {offsets = [0, 88], sizes = [16, 8], strides = [1, 1]} : vector<16x128xf32> to vector<16x8xf32>
    %35 = vector.shape_cast %34 : vector<16x8xf32> to vector<2x8x8xf32>
    %36 = tpu.concatenate %29, %31, %33, %35 in 0 : vector<2x8x8xf32>, vector<2x8x8xf32>, vector<2x8x8xf32>, vector<2x8x8xf32> -> vector<8x8x8xf32>
    "tpu.trace_start"() <{level = 10 : i32, message = "nqd,nkd->nqk"}> : () -> ()
    %cst_9 = arith.constant dense<0.000000e+00> : vector<8x8x8xf32>
    %37 = tpu.matmul %18, %27, %cst_9 {dimension_numbers = #tpu.dot_dimension_numbers<[2], [2], [1], [1], [0, 0, 0, 1, 1, 1], [0], [0]>} : vector<8x8x8xf32>, vector<8x8x8xf32>, vector<8x8x8xf32> -> vector<8x8x8xf32>
    "tpu.trace_stop"() : () -> ()
    %38 = vector.shape_cast %37 : vector<8x8x8xf32> to vector<4x2x8x8xf32>
    %cst_10 = arith.constant 0.353553385 : f32
    %39 = vector.broadcast %cst_10 : f32 to vector<4x2x8x8xf32>
    %40 = arith.mulf %38, %39 : vector<4x2x8x8xf32>
    %41 = vector.shape_cast %2 : vector<2x8x8xf32> to vector<1x2x8x8xf32>
    %42 = vector.broadcast %41 : vector<1x2x8x8xf32> to vector<4x2x8x8xf32>
    %43 = arith.addf %40, %42 : vector<4x2x8x8xf32>
    %cst_11 = arith.constant dense<0xFF800000> : vector<4x2x8xf32>
    %44 = vector.multi_reduction <maximumf>, %43, %cst_11 [3] : vector<4x2x8x8xf32> to vector<4x2x8xf32>
    %45 = vector.shape_cast %44 : vector<4x2x8xf32> to vector<4x2x8x1xf32>
    %46 = vector.broadcast %45 : vector<4x2x8x1xf32> to vector<4x2x8x8xf32>
    %47 = arith.subf %43, %46 : vector<4x2x8x8xf32>
    %48 = math.exp %47 : vector<4x2x8x8xf32>
    %cst_12 = arith.constant dense<0.000000e+00> : vector<4x2x8xf32>
    %49 = vector.multi_reduction <add>, %48, %cst_12 [3] : vector<4x2x8x8xf32> to vector<4x2x8xf32>
    %50 = vector.shape_cast %49 : vector<4x2x8xf32> to vector<4x2x8x1xf32>
    %51 = vector.broadcast %50 : vector<4x2x8x1xf32> to vector<4x2x8x8xf32>
    %52 = arith.divf %48, %51 : vector<4x2x8x8xf32>
    %53 = vector.shape_cast %52 : vector<4x2x8x8xf32> to vector<8x8x8xf32>
    "tpu.trace_start"() <{level = 10 : i32, message = "nqk,nkd->nqd"}> : () -> ()
    %cst_13 = arith.constant dense<0.000000e+00> : vector<8x8x8xf32>
    %54 = tpu.matmul %53, %36, %cst_13 {dimension_numbers = #tpu.dot_dimension_numbers<[2], [1], [1], [2], [0, 0, 0, 1, 1, 2], [0], [0]>} : vector<8x8x8xf32>, vector<8x8x8xf32>, vector<8x8x8xf32> -> vector<8x8x8xf32>
    "tpu.trace_stop"() : () -> ()
    %55 = vector.extract_strided_slice %54 {offsets = [0, 0, 0], sizes = [2, 8, 8], strides = [1, 1, 1]} : vector<8x8x8xf32> to vector<2x8x8xf32>
    %56 = vector.shape_cast %55 : vector<2x8x8xf32> to vector<16x8xf32>
    %57 = vector.extract_strided_slice %54 {offsets = [2, 0, 0], sizes = [2, 8, 8], strides = [1, 1, 1]} : vector<8x8x8xf32> to vector<2x8x8xf32>
    %58 = vector.shape_cast %57 : vector<2x8x8xf32> to vector<16x8xf32>
    %59 = vector.extract_strided_slice %54 {offsets = [4, 0, 0], sizes = [2, 8, 8], strides = [1, 1, 1]} : vector<8x8x8xf32> to vector<2x8x8xf32>
    %60 = vector.shape_cast %59 : vector<2x8x8xf32> to vector<16x8xf32>
    %61 = vector.extract_strided_slice %54 {offsets = [6, 0, 0], sizes = [2, 8, 8], strides = [1, 1, 1]} : vector<8x8x8xf32> to vector<2x8x8xf32>
    %62 = vector.shape_cast %61 : vector<2x8x8xf32> to vector<16x8xf32>
    %63 = tpu.concatenate %56, %58, %60, %62 in 1 : vector<16x8xf32>, vector<16x8xf32>, vector<16x8xf32>, vector<16x8xf32> -> vector<16x32xf32>
    %c0_14 = arith.constant 0 : index
    %c0_15 = arith.constant 0 : index
    %64 = vector.load %arg5[%c0_14, %c0_15] : memref<32x32xf32, #tpu.memory_space<vmem>>, vector<32x32xf32>
    %cst_16 = arith.constant dense<0.000000e+00> : vector<16x32xf32>
    %65 = tpu.matmul %63, %64, %cst_16 {dimension_numbers = #tpu.dot_dimension_numbers<[1], [0], [0], [1], [0, 0, 1, 1], [], []>} : vector<16x32xf32>, vector<32x32xf32>, vector<16x32xf32> -> vector<16x32xf32>
    %c0_17 = arith.constant 0 : index
    %c0_18 = arith.constant 0 : index
    %66 = vector.load %arg9[%c0_17, %c0_18] : memref<4x32xf32, #tpu.memory_space<vmem>>, vector<1x32xf32>
    %67 = vector.shape_cast %66 : vector<1x32xf32> to vector<32xf32>
    %68 = vector.shape_cast %67 : vector<32xf32> to vector<1x32xf32>
    %69 = vector.broadcast %68 : vector<1x32xf32> to vector<16x32xf32>
    %70 = arith.addf %65, %69 : vector<16x32xf32>
    %71 = arith.addf %70, %1 : vector<16x32xf32>
    %cst_19 = arith.constant dense<0.000000e+00> : vector<16xf32>
    %72 = vector.multi_reduction <add>, %71, %cst_19 [1] : vector<16x32xf32> to vector<16xf32>
    %73 = vector.shape_cast %72 : vector<16xf32> to vector<16x1xf32>
    %cst_20 = arith.constant 3.200000e+01 : f32
    %74 = vector.broadcast %cst_20 : f32 to vector<16x1xf32>
    %75 = arith.divf %73, %74 : vector<16x1xf32>
    %76 = vector.broadcast %75 : vector<16x1xf32> to vector<16x32xf32>
    %77 = arith.subf %71, %76 : vector<16x32xf32>
    %78 = vector.broadcast %75 : vector<16x1xf32> to vector<16x32xf32>
    %79 = arith.subf %71, %78 : vector<16x32xf32>
    %80 = arith.mulf %77, %79 : vector<16x32xf32>
    %cst_21 = arith.constant dense<0.000000e+00> : vector<16xf32>
    %81 = vector.multi_reduction <add>, %80, %cst_21 [1] : vector<16x32xf32> to vector<16xf32>
    %82 = vector.shape_cast %81 : vector<16xf32> to vector<16x1xf32>
    %cst_22 = arith.constant 3.200000e+01 : f32
    %83 = vector.broadcast %cst_22 : f32 to vector<16x1xf32>
    %84 = arith.divf %82, %83 : vector<16x1xf32>
    %85 = vector.broadcast %75 : vector<16x1xf32> to vector<16x32xf32>
    %86 = arith.subf %71, %85 : vector<16x32xf32>
    %cst_23 = arith.constant 9.99999974E-6 : f32
    %87 = vector.broadcast %cst_23 : f32 to vector<16x1xf32>
    %88 = arith.addf %84, %87 : vector<16x1xf32>
    %89 = math.rsqrt %88 : vector<16x1xf32>
    %90 = vector.broadcast %89 : vector<16x1xf32> to vector<16x32xf32>
    %91 = arith.mulf %86, %90 : vector<16x32xf32>
    %c1 = arith.constant 1 : index
    %c0_24 = arith.constant 0 : index
    %92 = vector.load %arg9[%c1, %c0_24] : memref<4x32xf32, #tpu.memory_space<vmem>>, vector<1x32xf32>
    %93 = vector.shape_cast %92 : vector<1x32xf32> to vector<32xf32>
    %94 = vector.shape_cast %93 : vector<32xf32> to vector<1x32xf32>
    %95 = vector.broadcast %94 : vector<1x32xf32> to vector<16x32xf32>
    %96 = arith.mulf %91, %95 : vector<16x32xf32>
    %c2 = arith.constant 2 : index
    %c0_25 = arith.constant 0 : index
    %97 = vector.load %arg9[%c2, %c0_25] : memref<4x32xf32, #tpu.memory_space<vmem>>, vector<1x32xf32>
    %98 = vector.shape_cast %97 : vector<1x32xf32> to vector<32xf32>
    %99 = vector.shape_cast %98 : vector<32xf32> to vector<1x32xf32>
    %100 = vector.broadcast %99 : vector<1x32xf32> to vector<16x32xf32>
    %101 = arith.addf %96, %100 : vector<16x32xf32>
    %c0_26 = arith.constant 0 : index
    %c0_27 = arith.constant 0 : index
    %102 = vector.load %arg6[%c0_26, %c0_27] : memref<32x64xf32, #tpu.memory_space<vmem>>, vector<32x64xf32>
    %cst_28 = arith.constant dense<0.000000e+00> : vector<16x64xf32>
    %103 = tpu.matmul %101, %102, %cst_28 {dimension_numbers = #tpu.dot_dimension_numbers<[1], [0], [0], [1], [0, 0, 1, 1], [], []>} : vector<16x32xf32>, vector<32x64xf32>, vector<16x64xf32> -> vector<16x64xf32>
    %c0_29 = arith.constant 0 : index
    %c0_30 = arith.constant 0 : index
    %104 = vector.load %arg7[%c0_29, %c0_30] : memref<1x64xf32, #tpu.memory_space<vmem>>, vector<1x64xf32>
    %105 = vector.shape_cast %104 : vector<1x64xf32> to vector<64xf32>
    %106 = vector.shape_cast %105 : vector<64xf32> to vector<1x64xf32>
    %107 = vector.broadcast %106 : vector<1x64xf32> to vector<16x64xf32>
    %108 = arith.addf %103, %107 : vector<16x64xf32>
    %cst_31 = arith.constant 5.000000e-01 : f32
    %109 = vector.broadcast %cst_31 : f32 to vector<16x64xf32>
    %110 = arith.mulf %108, %109 : vector<16x64xf32>
    %cst_32 = arith.constant 1.41421354 : f32
    %111 = vector.broadcast %cst_32 : f32 to vector<16x64xf32>
    %112 = arith.divf %108, %111 : vector<16x64xf32>
    %113 = math.erf %112 : vector<16x64xf32>
    %cst_33 = arith.constant 1.000000e+00 : f32
    %114 = vector.broadcast %cst_33 : f32 to vector<16x64xf32>
    %115 = arith.addf %114, %113 : vector<16x64xf32>
    %116 = arith.mulf %110, %115 : vector<16x64xf32>
    %c0_34 = arith.constant 0 : index
    %c0_35 = arith.constant 0 : index
    %117 = vector.load %arg8[%c0_34, %c0_35] : memref<64x32xf32, #tpu.memory_space<vmem>>, vector<64x32xf32>
    %cst_36 = arith.constant dense<0.000000e+00> : vector<16x32xf32>
    %118 = tpu.matmul %116, %117, %cst_36 {dimension_numbers = #tpu.dot_dimension_numbers<[1], [0], [0], [1], [0, 0, 1, 1], [], []>} : vector<16x64xf32>, vector<64x32xf32>, vector<16x32xf32> -> vector<16x32xf32>
    %c3 = arith.constant 3 : index
    %c0_37 = arith.constant 0 : index
    %119 = vector.load %arg9[%c3, %c0_37] : memref<4x32xf32, #tpu.memory_space<vmem>>, vector<1x32xf32>
    %120 = vector.shape_cast %119 : vector<1x32xf32> to vector<32xf32>
    %121 = vector.shape_cast %120 : vector<32xf32> to vector<1x32xf32>
    %122 = vector.broadcast %121 : vector<1x32xf32> to vector<16x32xf32>
    %123 = arith.addf %118, %122 : vector<16x32xf32>
    %124 = vector.shape_cast %123 : vector<16x32xf32> to vector<2x8x32xf32>
    %125 = vector.extract_strided_slice %124 {offsets = [0, 0, 0], sizes = [2, 1, 32], strides = [1, 1, 1]} : vector<2x8x32xf32> to vector<2x1x32xf32>
    %126 = vector.shape_cast %125 : vector<2x1x32xf32> to vector<2x32xf32>
    %127 = vector.extract_strided_slice %124 {offsets = [0, 1, 0], sizes = [2, 1, 32], strides = [1, 1, 1]} : vector<2x8x32xf32> to vector<2x1x32xf32>
    %128 = vector.shape_cast %127 : vector<2x1x32xf32> to vector<2x32xf32>
    %129 = vector.extract_strided_slice %124 {offsets = [0, 2, 0], sizes = [2, 1, 32], strides = [1, 1, 1]} : vector<2x8x32xf32> to vector<2x1x32xf32>
    %130 = vector.shape_cast %129 : vector<2x1x32xf32> to vector<2x32xf32>
    %131 = vector.extract_strided_slice %124 {offsets = [0, 3, 0], sizes = [2, 1, 32], strides = [1, 1, 1]} : vector<2x8x32xf32> to vector<2x1x32xf32>
    %132 = vector.shape_cast %131 : vector<2x1x32xf32> to vector<2x32xf32>
    %133 = vector.extract_strided_slice %124 {offsets = [0, 4, 0], sizes = [2, 1, 32], strides = [1, 1, 1]} : vector<2x8x32xf32> to vector<2x1x32xf32>
    %134 = vector.shape_cast %133 : vector<2x1x32xf32> to vector<2x32xf32>
    %135 = vector.extract_strided_slice %124 {offsets = [0, 5, 0], sizes = [2, 1, 32], strides = [1, 1, 1]} : vector<2x8x32xf32> to vector<2x1x32xf32>
    %136 = vector.shape_cast %135 : vector<2x1x32xf32> to vector<2x32xf32>
    %137 = vector.extract_strided_slice %124 {offsets = [0, 6, 0], sizes = [2, 1, 32], strides = [1, 1, 1]} : vector<2x8x32xf32> to vector<2x1x32xf32>
    %138 = vector.shape_cast %137 : vector<2x1x32xf32> to vector<2x32xf32>
    %139 = vector.extract_strided_slice %124 {offsets = [0, 7, 0], sizes = [2, 1, 32], strides = [1, 1, 1]} : vector<2x8x32xf32> to vector<2x1x32xf32>
    %140 = vector.shape_cast %139 : vector<2x1x32xf32> to vector<2x32xf32>
    %141 = tpu.concatenate %126, %128, %130, %132, %134, %136, %138, %140 in 1 : vector<2x32xf32>, vector<2x32xf32>, vector<2x32xf32>, vector<2x32xf32>, vector<2x32xf32>, vector<2x32xf32>, vector<2x32xf32>, vector<2x32xf32> -> vector<2x256xf32>
    %c0_38 = arith.constant 0 : index
    %c0_39 = arith.constant 0 : index
    %142 = vector.load %arg10[%c0_38, %c0_39] : memref<2x256xf32, #tpu.memory_space<vmem>>, vector<2x256xf32>
    tpu.vector_store %arg10[%c0_38, %c0_39], %141 {strides = array<i32>} : memref<2x256xf32, #tpu.memory_space<vmem>>, vector<2x256xf32>,
    %143 = vector.extract_strided_slice %52 {offsets = [0, 0, 0, 0], sizes = [1, 2, 8, 8], strides = [1, 1, 1, 1]} : vector<4x2x8x8xf32> to vector<1x2x8x8xf32>
    %144 = vector.shape_cast %143 : vector<1x2x8x8xf32> to vector<2x8x8xf32>
    %145 = vector.extract_strided_slice %52 {offsets = [1, 0, 0, 0], sizes = [1, 2, 8, 8], strides = [1, 1, 1, 1]} : vector<4x2x8x8xf32> to vector<1x2x8x8xf32>
    %146 = vector.shape_cast %145 : vector<1x2x8x8xf32> to vector<2x8x8xf32>
    %147 = vector.extract_strided_slice %52 {offsets = [2, 0, 0, 0], sizes = [1, 2, 8, 8], strides = [1, 1, 1, 1]} : vector<4x2x8x8xf32> to vector<1x2x8x8xf32>
    %148 = vector.shape_cast %147 : vector<1x2x8x8xf32> to vector<2x8x8xf32>
    %149 = vector.extract_strided_slice %52 {offsets = [3, 0, 0, 0], sizes = [1, 2, 8, 8], strides = [1, 1, 1, 1]} : vector<4x2x8x8xf32> to vector<1x2x8x8xf32>
    %150 = vector.shape_cast %149 : vector<1x2x8x8xf32> to vector<2x8x8xf32>
    %151 = tpu.concatenate %144, %146, %148, %150 in 2 : vector<2x8x8xf32>, vector<2x8x8xf32>, vector<2x8x8xf32>, vector<2x8x8xf32> -> vector<2x8x32xf32>
    %152 = vector.extract_strided_slice %151 {offsets = [0, 0, 0], sizes = [2, 1, 32], strides = [1, 1, 1]} : vector<2x8x32xf32> to vector<2x1x32xf32>
    %153 = vector.shape_cast %152 : vector<2x1x32xf32> to vector<2x32xf32>
    %154 = vector.extract_strided_slice %151 {offsets = [0, 1, 0], sizes = [2, 1, 32], strides = [1, 1, 1]} : vector<2x8x32xf32> to vector<2x1x32xf32>
    %155 = vector.shape_cast %154 : vector<2x1x32xf32> to vector<2x32xf32>
    %156 = vector.extract_strided_slice %151 {offsets = [0, 2, 0], sizes = [2, 1, 32], strides = [1, 1, 1]} : vector<2x8x32xf32> to vector<2x1x32xf32>
    %157 = vector.shape_cast %156 : vector<2x1x32xf32> to vector<2x32xf32>
    %158 = vector.extract_strided_slice %151 {offsets = [0, 3, 0], sizes = [2, 1, 32], strides = [1, 1, 1]} : vector<2x8x32xf32> to vector<2x1x32xf32>
    %159 = vector.shape_cast %158 : vector<2x1x32xf32> to vector<2x32xf32>
    %160 = vector.extract_strided_slice %151 {offsets = [0, 4, 0], sizes = [2, 1, 32], strides = [1, 1, 1]} : vector<2x8x32xf32> to vector<2x1x32xf32>
    %161 = vector.shape_cast %160 : vector<2x1x32xf32> to vector<2x32xf32>
    %162 = vector.extract_strided_slice %151 {offsets = [0, 5, 0], sizes = [2, 1, 32], strides = [1, 1, 1]} : vector<2x8x32xf32> to vector<2x1x32xf32>
    %163 = vector.shape_cast %162 : vector<2x1x32xf32> to vector<2x32xf32>
    %164 = vector.extract_strided_slice %151 {offsets = [0, 6, 0], sizes = [2, 1, 32], strides = [1, 1, 1]} : vector<2x8x32xf32> to vector<2x1x32xf32>
    %165 = vector.shape_cast %164 : vector<2x1x32xf32> to vector<2x32xf32>
    %166 = vector.extract_strided_slice %151 {offsets = [0, 7, 0], sizes = [2, 1, 32], strides = [1, 1, 1]} : vector<2x8x32xf32> to vector<2x1x32xf32>
    %167 = vector.shape_cast %166 : vector<2x1x32xf32> to vector<2x32xf32>
    %168 = tpu.concatenate %153, %155, %157, %159, %161, %163, %165, %167 in 1 : vector<2x32xf32>, vector<2x32xf32>, vector<2x32xf32>, vector<2x32xf32>, vector<2x32xf32>, vector<2x32xf32>, vector<2x32xf32>, vector<2x32xf32> -> vector<2x256xf32>
    %c0_40 = arith.constant 0 : index
    %c0_41 = arith.constant 0 : index
    %169 = vector.load %arg11[%c0_40, %c0_41] : memref<2x256xf32, #tpu.memory_space<vmem>>, vector<2x256xf32>
    tpu.vector_store %arg11[%c0_40, %c0_41], %168 {strides = array<i32>} : memref<2x256xf32, #tpu.memory_space<vmem>>, vector<2x256xf32>,
    return
  }
  func.func @transform_0(%arg0: i32) -> (i32, i32, i32) {
    %c0_i32 = arith.constant 0 : i32
    %c0_i32_0 = arith.constant 0 : i32
    %c0_i32_1 = arith.constant 0 : i32
    return %arg0, %c0_i32, %c0_i32_0 : i32, i32, i32
  }
  func.func @transform_1(%arg0: i32) -> (i32, i32, i32) {
    %c0_i32 = arith.constant 0 : i32
    %c0_i32_0 = arith.constant 0 : i32
    %c0_i32_1 = arith.constant 0 : i32
    return %arg0, %c0_i32, %c0_i32_0 : i32, i32, i32
  }
  func.func @transform_2(%arg0: i32) -> (i32, i32) {
    %c0_i32 = arith.constant 0 : i32
    %c0_i32_0 = arith.constant 0 : i32
    %c0_i32_1 = arith.constant 0 : i32
    return %c0_i32, %c0_i32_0 : i32, i32
  }
  func.func @transform_3(%arg0: i32) -> (i32, i32) {
    %c0_i32 = arith.constant 0 : i32
    %c0_i32_0 = arith.constant 0 : i32
    %c0_i32_1 = arith.constant 0 : i32
    return %c0_i32, %c0_i32_0 : i32, i32
  }
  func.func @transform_4(%arg0: i32) -> (i32, i32) {
    %c0_i32 = arith.constant 0 : i32
    %c0_i32_0 = arith.constant 0 : i32
    %c0_i32_1 = arith.constant 0 : i32
    return %c0_i32, %c0_i32_0 : i32, i32
  }
  func.func @transform_5(%arg0: i32) -> (i32, i32) {
    %c0_i32 = arith.constant 0 : i32
    %c0_i32_0 = arith.constant 0 : i32
    %c0_i32_1 = arith.constant 0 : i32
    return %c0_i32, %c0_i32_0 : i32, i32
  }
  func.func @transform_6(%arg0: i32) -> (i32, i32) {
    %c0_i32 = arith.constant 0 : i32
    %c0_i32_0 = arith.constant 0 : i32
    %c0_i32_1 = arith.constant 0 : i32
    return %c0_i32, %c0_i32_0 : i32, i32
  }
  func.func @transform_7(%arg0: i32) -> (i32, i32) {
    %c0_i32 = arith.constant 0 : i32
    %c0_i32_0 = arith.constant 0 : i32
    %c0_i32_1 = arith.constant 0 : i32
    return %c0_i32, %c0_i32_0 : i32, i32
  }
  func.func @transform_8(%arg0: i32) -> (i32, i32) {
    %c0_i32 = arith.constant 0 : i32
    %c0_i32_0 = arith.constant 0 : i32
    %c0_i32_1 = arith.constant 0 : i32
    return %c0_i32, %c0_i32_0 : i32, i32
  }
  func.func @transform_9(%arg0: i32) -> (i32, i32) {
    %c0_i32 = arith.constant 0 : i32
    %c0_i32_0 = arith.constant 0 : i32
    return %arg0, %c0_i32 : i32, i32
  }
  func.func @transform_10(%arg0: i32) -> (i32, i32) {
    %c0_i32 = arith.constant 0 : i32
    %c0_i32_0 = arith.constant 0 : i32
    return %arg0, %c0_i32 : i32, i32
  }
}

</mosaic_0001>

<bundles_post_ra>
// kernel: tpu_custom_call.1
= control target key start
LH: loop header
LB: loop body
LE: loop exit
PB: predicated region body
PF: predicated region fallthrough
CT: control target
= control target key end

     0   :  { %16 = vsyncpa [#allocation3], 0  ;;  %s2882_s0 = inlined_call_operand.hbm [shape: f32[2,8,32], index: 0, kind: input, shape index: {}]   ;;  %s2883_s1 = inlined_call_operand.hbm [shape: f32[2,8,8], index: 1, kind: input, shape index: {}]   ;;  %s2884_s2 = inlined_call_operand.vmem [shape: f32[32,128], index: 2, kind: input, shape index: {}]   ;;  %s2885_s3 = inlined_call_operand.vmem [shape: f32[1,128], index: 3, kind: input, shape index: {}]   ;;  %s2886_s4 = inlined_call_operand.vmem [shape: f32[32,32], index: 4, kind: input, shape index: {}]   ;;  %s2887_s5 = inlined_call_operand.vmem [shape: f32[32,64], index: 5, kind: input, shape index: {}]   ;;  %s2888_s6 = inlined_call_operand.vmem [shape: f32[1,64], index: 6, kind: input, shape index: {}]   ;;  %s2889_s7 = inlined_call_operand.vmem [shape: f32[64,32], index: 7, kind: input, shape index: {}]   ;;  %s2890_s8 = inlined_call_operand.vmem [shape: f32[4,32], index: 8, kind: input, shape index: {}]   ;;  %s2891_s9 = inlined_call_operand.hbm [shape: f32[2,256], index: 9, kind: output, shape index: {0}]   ;;  %s2892_s10 = inlined_call_operand.hbm [shape: f32[2,256], index: 10, kind: output, shape index: {1}]  }
   0x1   :  { %17 = vsyncpa [#allocation6], 0 }
   0x2   :  { %18 = vsyncpa [#allocation4], 0 }
   0x3   :  { %19 = vsyncpa [#allocation9], 0  ;;  %s2415_s13 = smov [#allocation2]  }
   0x4   :  { %s25_s14 = sshll.u32 %s2415_s13, 4  ;;  %s26_s14 = int_to_ptr.vmem [resolvable:$true] %s25_s14 }
   0x5   :  { %s2335_s15 = scalar_lea.vmem %s26_s14, 256  ;;  %p2340_p1 = scmp.lt.s32.totalorder %s26_s14, %s26_s14 }
   0x6   :  { %p2336_p0 = scmp.ne.s32.totalorder %s26_s14, %s2335_s15  ;;  %p2341_p2 = scmp.lt.s32.totalorder %s2335_s15, %s2335_s15 }
   0x8   :  { %p2342_p3 = por %p2341_p2, %p2340_p1 }
   0xa   :  { %p2343_p4 = pnand %p2342_p3, %p2336_p0 }
   0xc   :  { %2346 = shalt.err (!%p2343_p4)
}
   0xd   :  { %s2416_s16 = smov 128   ;;  %s2417_s17 = smov 8  }
   0xe   :  { %31 = dma.hbm_to_vmem [thread:$0]  %s2882_s0, 256, %s26_s14, [#allocation3], %s2416_s16, %s2416_s16, %s2417_s17  }
   0xf   :  { %s2418_s20 = smov [#allocation5]  }
  0x10   :  { %s37_s21 = sshll.u32 %s2418_s20, 4  ;;  %s38_s21 = int_to_ptr.vmem [resolvable:$true] %s37_s21 }
  0x11   :  { %s2355_s22 = scalar_lea.vmem %s38_s21, 256  ;;  %p2360_p6 = scmp.lt.s32.totalorder %s38_s21, %s38_s21 }
  0x12   :  { %p2356_p5 = scmp.ne.s32.totalorder %s38_s21, %s2355_s22  ;;  %p2361_p7 = scmp.lt.s32.totalorder %s2355_s22, %s2355_s22 }
  0x14   :  { %p2362_p8 = por %p2361_p7, %p2360_p6 }
  0x16   :  { %p2363_p9 = pnand %p2362_p8, %p2356_p5 }
  0x18   :  { %2366 = shalt.err (!%p2363_p9)
}
  0x19   :  { %43 = dma.hbm_to_vmem [thread:$0]  %s2883_s1, 256, %s38_s21, [#allocation6], %s2416_s16, %s2416_s16, %s2417_s17  }
  0x1a   :  { %2407 = dma.done.wait [#allocation3], 256  }
  0x1b   :  { %2408 = vsyncadd [#allocation3], 4294967040 }
  0x1c   :  { %2409 = dma.done.wait [#allocation6], 256  }
  0x1d   :  { %2410 = vsyncadd [#allocation6], 4294967040  ;;  %vm79_vm0 = vcmask 261120   ;;  %v71_v0 = vld [vmem:[%s2884_s2 + $0x18] sm:$0xff]  ;;  %v70_v1 = vld [vmem:[%s2884_s2 + $0x10] sm:$0xff]  ;;  %v2419_v7 = vmov 0.0  }
  0x1e   :  { %2139 = vmatprep.subr.mxu1 %v71_v0  ;;  %v2500_v2 = vld [vmem:[#allocation2] sm:$0xff]  ;;  %v69_v3 = vld [vmem:[%s2884_s2 + $0x8] sm:$0xff]  ;;  %2160 = vmatprep.subr.mxu0 %v2419_v7  ;;  %s2421_s13 = smov 120   ;;  %vm2422_vm1 = vmmov 0   ;;  %s2424_s14 = smov 96   ;;  %vm177_vm2 = vcmask 64512  }
  0x1f   :  { %2140 = vmatpush3.msra.mxu1 %v71_v0  ;;  %2147 = vmatprep.mubr.msk.f32.mxu1 %vm79_vm0, %v2500_v2  ;;  %v68_v4 = vld [vmem:[%s2884_s2] sm:$0xff]  ;;  %v2510_v5 = vld [vmem:[#allocation2 + $0x8] sm:$0xff]  ;;  %s2420_s2 = smov 112   ;;  %v66_v27 = vld [vmem:[#allocation5] sm:$0xff]  ;;  %s2425_s15 = smov 64   ;;  %vm1522_vm3 = vcmask 130048  }
  0x20   :  { %2141 = vmatprep.subr.mxu1 %v70_v1  ;;  %v2039_v8 = vld [vmem:[%s2885_s3] ss:$0 sm:$0xff]  ;;  %2162 = vmatprep.mubr.msk.f32.mxu0 %vm2422_vm1, %v2419_v7  ;;  %s2423_s3 = smov 104   ;;  %v67_v32 = vld [vmem:[#allocation5 + $0x8] sm:$0xff]  ;;  %s2426_s0 = smov 16   ;;  %vm1525_vm4 = vcmask 195584  }
  0x21   :  { %2142 = vmatpush3.msra.mxu1 %v70_v1  ;;  %s2427_s25 = smov 24   ;;  %vm1862_vm5 = vcmask 1041409   ;;  %vm1777_vm6 = vcmask 523264   ;;  %vm1906_vm7 = vcmask 785408  }
  0x22   :  { %2143 = vmatprep.subr.mxu1 %v69_v3 }
  0x23   :  { %2144 = vmatpush3.msra.mxu1 %v69_v3 }
  0x24   :  { %2145 = vmatprep.subr.mxu1 %v68_v4 }
  0x25   :  { %2146 = vmatpush3.msra.mxu1 %v68_v4 }
  0x26   :  { %2148 = vmatmul.mubr.msk.f32.vlgmr.msra.gmra.mxu1 %vm79_vm0, %v2510_v5  ;;  %2150 = vmatprep.subr.mxu1 %v2419_v7 }
  0x27   :  { %2152 = vmatprep.mubr.msk.f32.mxu1 %vm2422_vm1, %v2419_v7 }
  0xe6   :  { %v2149_v6 = vpop.f32.mrf.mxu1 }
  0xe7   :  { %v2527_v11 = vadd.f32 %v2149_v6, %v2039_v8 }
  0xe8   :  { %v152_v9 = vpop.f32.mrf.mxu1 }
  0xe9   :  { %v2519_v10 = vadd.f32 %v2039_v8, %v152_v9 }
  0xeb   :  { %167 = vrot.lane.b32.xlu1 %v2519_v10, %s2420_s2  ;;  %163 = vrot.lane.b32.xlu0 %v2519_v10, %s2421_s13 }
  0xef   :  { %169 = vrot.lane.b32.xlu1 %v2527_v11, %s2420_s2  ;;  %165 = vrot.lane.b32.xlu0 %v2527_v11, %s2421_s13 }
  0xf3   :  { %173 = vrot.lane.b32.xlu1 %v2527_v11, %s2423_s3  ;;  %171 = vrot.lane.b32.xlu0 %v2519_v10, %s2423_s3 }
  0xf7   :  { %252 = vrot.lane.b32.xlu1 %v2527_v11, %s2424_s14  ;;  %175 = vrot.lane.b32.xlu0 %v2519_v10, %s2424_s14 }
 0x15d   :  { %v2537_v12 = vpop.permute.xlu1 %167  ;;  %v2539_v13 = vpop.permute.xlu0 %163 }
 0x15e   :  { %328 = vrot.lane.b32.xlu0 %v2539_v13, %s2424_s14 }
 0x161   :  { %v2543_v14 = vpop.permute.xlu1 %169  ;;  %v2545_v15 = vpop.permute.xlu0 %165 }
 0x162   :  { %480 = vrot.lane.b32.xlu0 %v2537_v12, %s2424_s14  ;;  %404 = vrot.lane.b32.xlu1 %v2545_v15, %s2424_s14 }
 0x165   :  { %v2551_v16 = vpop.permute.xlu0 %171  ;;  %v2557_v17 = vpop.permute.xlu1 %173 }
 0x166   :  { %556 = vrot.lane.b32.xlu1 %v2543_v14, %s2424_s14  ;;  %632 = vrot.lane.b32.xlu0 %v2551_v16, %s2424_s14 }
 0x169   :  { %v176_v18 = vpop.permute.xlu0 %175  ;;  %v253_v19 = vpop.permute.xlu1 %252 }
 0x16a   :  { %708 = vrot.lane.b32.xlu1 %v2557_v17, %s2424_s14  ;;  %2151 = vmatpush3.xpose.msk.msra.mxu1 %vm177_vm2, %v176_v18 }
 0x16b   :  { %2155 = vmatprep.subr.mxu1 %v2419_v7 }
 0x16d   :  { %2153 = vmatmul.mubr.msk.f32.vlgmr.msra.gmra.mxu1 %vm177_vm2, %v2519_v10 }
 0x16e   :  { %2156 = vmatpush3.xpose.msk.msra.mxu1 %vm177_vm2, %v253_v19  ;;  %2157 = vmatprep.mubr.msk.f32.mxu1 %vm2422_vm1, %v2419_v7 }
 0x16f   :  { %2165 = vmatprep.subr.mxu1 %v2419_v7 }
 0x171   :  { %2158 = vmatmul.mubr.msk.f32.vlgmr.msra.gmra.mxu1 %vm177_vm2, %v2527_v11 }
 0x172   :  { %2167 = vmatprep.mubr.msk.f32.mxu1 %vm2422_vm1, %v2419_v7 }
 0x1d0   :  { %v329_v20 = vpop.permute.xlu0 %328 }
 0x1d1   :  { %2161 = vmatpush3.xpose.msk.msra.mxu0 %vm177_vm2, %v329_v20 }
 0x1d2   :  { %2170 = vmatprep.subr.mxu0 %v2419_v7 }
 0x1d4   :  { %v405_v21 = vpop.permute.xlu1 %404  ;;  %2163 = vmatmul.mubr.msk.f32.vlgmr.msra.gmra.mxu0 %vm177_vm2, %v2539_v13  ;;  %v481_v22 = vpop.permute.xlu0 %480 }
 0x1d5   :  { %2166 = vmatpush3.xpose.msk.msra.mxu1 %vm177_vm2, %v405_v21  ;;  %2171 = vmatpush3.xpose.msk.msra.mxu0 %vm177_vm2, %v481_v22 }
 0x1d6   :  { %2172 = vmatprep.mubr.msk.f32.mxu0 %vm2422_vm1, %v2419_v7  ;;  %2175 = vmatprep.subr.mxu1 %v2419_v7 }
 0x1d7   :  { %2180 = vmatprep.subr.mxu0 %v2419_v7 }
 0x1d8   :  { %v557_v23 = vpop.permute.xlu1 %556  ;;  %2168 = vmatmul.mubr.msk.f32.vlgmr.msra.gmra.mxu1 %vm177_vm2, %v2545_v15  ;;  %2173 = vmatmul.mubr.msk.f32.vlgmr.msra.gmra.mxu0 %vm177_vm2, %v2537_v12  ;;  %v633_v24 = vpop.permute.xlu0 %632 }
 0x1d9   :  { %2176 = vmatpush3.xpose.msk.msra.mxu1 %vm177_vm2, %v557_v23  ;;  %2181 = vmatpush3.xpose.msk.msra.mxu0 %vm177_vm2, %v633_v24 }
 0x1da   :  { %2177 = vmatprep.mubr.msk.f32.mxu1 %vm2422_vm1, %v2419_v7  ;;  %2182 = vmatprep.mubr.msk.f32.mxu0 %vm2422_vm1, %v2419_v7 }
 0x1db   :  { %2185 = vmatprep.subr.mxu1 %v2419_v7  ;;  %2190 = vmatprep.subr.mxu0 %v2419_v7 }
 0x1dc   :  { %v709_v25 = vpop.permute.xlu1 %708  ;;  %2178 = vmatmul.mubr.msk.f32.vlgmr.msra.gmra.mxu1 %vm177_vm2, %v2543_v14  ;;  %2183 = vmatmul.mubr.msk.f32.vlgmr.msra.gmra.mxu0 %vm177_vm2, %v2551_v16 }
 0x1dd   :  { %2186 = vmatpush3.xpose.msk.msra.mxu1 %vm177_vm2, %v709_v25  ;;  %2187 = vmatprep.mubr.msk.f32.mxu1 %vm2422_vm1, %v2419_v7 }
 0x1de   :  { %2195 = vmatprep.subr.mxu1 %v2419_v7  ;;  %2192 = vmatprep.mubr.msk.f32.mxu0 %vm2422_vm1, %v2419_v7 }
 0x1e0   :  { %2188 = vmatmul.mubr.msk.f32.vlgmr.msra.gmra.mxu1 %vm177_vm2, %v2557_v17 }
 0x1e1   :  { %2197 = vmatprep.mubr.msk.f32.mxu1 %vm2422_vm1, %v2419_v7 }
 0x22d   :  { %v248_v26 = vpop.f32.mrf.mxu1 }
 0x22e   :  { %v784_v28 = vmul.f32 0.35355338, %v248_v26 }
 0x22f   :  { %v2154_v29 = vpop.f32.mrf.mxu1 }
 0x230   :  { %v792_v30 = vadd.f32 %v784_v28, %v66_v27 }
 0x231   :  { %v324_v31 = vpop.f32.mrf.mxu1 }
 0x232   :  { %v785_v33 = vmul.f32 0.35355338, %v324_v31  ;;  %v800_v34 = vsel %vm177_vm2, %v792_v30, -inf }
 0x233   :  { %801 = vmax.xlane.f32.xlu0 %v800_v34  ;;  %v2159_v35 = vpop.f32.mrf.mxu1 }
 0x234   :  { %v793_v36 = vadd.f32 %v785_v33, %v67_v32 }
 0x236   :  { %v803_v37 = vsel %vm177_vm2, %v793_v36, -inf }
 0x237   :  { %804 = vmax.xlane.f32.xlu1 %v803_v37 }
 0x294   :  { %v400_v38 = vpop.f32.mrf.mxu0 }
 0x295   :  { %v786_v39 = vmul.f32 0.35355338, %v400_v38 }
 0x296   :  { %v2164_v40 = vpop.f32.mrf.mxu0 }
 0x297   :  { %v794_v41 = vadd.f32 %v786_v39, %v66_v27 }
 0x298   :  { %v476_v42 = vpop.f32.mrf.mxu1  ;;  %v552_v43 = vpop.f32.mrf.mxu0 }
 0x299   :  { %v787_v44 = vmul.f32 0.35355338, %v476_v42  ;;  %v788_v45 = vmul.f32 0.35355338, %v552_v43  ;;  %v806_v46 = vsel %vm177_vm2, %v794_v41, -inf }
 0x29a   :  { %v2169_v47 = vpop.f32.mrf.mxu1  ;;  %807 = vmax.xlane.f32.xlu0 %v806_v46  ;;  %v2174_v48 = vpop.f32.mrf.mxu0 }
 0x29b   :  { %v795_v49 = vadd.f32 %v787_v44, %v67_v32  ;;  %v796_v50 = vadd.f32 %v788_v45, %v66_v27 }
 0x29c   :  { %v628_v51 = vpop.f32.mrf.mxu1  ;;  %v704_v52 = vpop.f32.mrf.mxu0 }
 0x29d   :  { %v789_v53 = vmul.f32 0.35355338, %v628_v51  ;;  %v790_v54 = vmul.f32 0.35355338, %v704_v52  ;;  %v809_v55 = vsel %vm177_vm2, %v795_v49, -inf  ;;  %v812_v56 = vsel %vm177_vm2, %v796_v50, -inf }
 0x29e   :  { %v2179_v57 = vpop.f32.mrf.mxu1  ;;  %810 = vmax.xlane.f32.xlu0 %v809_v55  ;;  %813 = vmax.xlane.f32.xlu1 %v812_v56  ;;  %v2184_v58 = vpop.f32.mrf.mxu0 }
 0x29f   :  { %v797_v59 = vadd.f32 %v789_v53, %v67_v32  ;;  %v798_v60 = vadd.f32 %v790_v54, %v66_v27 }
 0x2a0   :  { %v780_v61 = vpop.f32.mrf.mxu1 }
 0x2a1   :  { %v791_v62 = vmul.f32 0.35355338, %v780_v61  ;;  %v815_v63 = vsel %vm177_vm2, %v797_v59, -inf  ;;  %v818_v0 = vsel %vm177_vm2, %v798_v60, -inf }
 0x2a2   :  { %v2189_v1 = vpop.f32.mrf.mxu1  ;;  %816 = vmax.xlane.f32.xlu0 %v815_v63  ;;  %819 = vmax.xlane.f32.xlu1 %v818_v0 }
 0x2a3   :  { %v799_v3 = vadd.f32 %v791_v62, %v67_v32 }
 0x2a5   :  { %v821_v4 = vsel %vm177_vm2, %v799_v3, -inf }
 0x2a6   :  { %822 = vmax.xlane.f32.xlu0 %v821_v4 }
 0x2b3   :  { %888 = vrot.lane.b32.xlu1 %v2519_v10, %s2425_s15 }
 0x2b7   :  { %1040 = vrot.lane.b32.xlu1 %v2539_v13, %s2425_s15 }
 0x2bb   :  { %1116 = vrot.lane.b32.xlu1 %v2545_v15, %s2425_s15 }
 0x2bc   :  { %964 = vrot.lane.b32.xlu0 %v2527_v11, %s2425_s15  ;;  %v802_v9 = vpop.xlane.xlu0 %801 }
 0x2bd   :  { %v824_v18 = vsub.f32 %v792_v30, %v802_v9 }
 0x2bf   :  { %1268 = vrot.lane.b32.xlu1 %v2543_v14, %s2425_s15  ;;  %v832_v19 = vmul.f32 1.442695, %v824_v18 }
 0x2c0   :  { %1192 = vrot.lane.b32.xlu0 %v2537_v12, %s2425_s15  ;;  %v805_v6 = vpop.xlane.xlu1 %804 }
 0x2c1   :  { %v825_v8 = vsub.f32 %v793_v36, %v805_v6 }
 0x2c3   :  { %v834_v10 = vmul.f32 1.442695, %v825_v8 }
 0x2c5   :  { %2287 = vpow2.f32 %v834_v10 }
 0x2c6   :  { %2289 = vpow2.f32 %v832_v19 }
 0x2d2   :  { %v2629_v13 = vpop.eup %2287 }
 0x2d3   :  { %v851_v15 = vsel %vm177_vm2, %v2629_v13, 0.0  ;;  %v2633_v11 = vpop.eup %2289 }
 0x2d4   :  { %v848_v14 = vsel %vm177_vm2, %v2633_v11, 0.0 }
 0x2df   :  { %852 = vadd.xlane.f32.xlu0 %v851_v15 }
 0x2e3   :  { %849 = vadd.xlane.f32.xlu1 %v848_v14 }
 0x323   :  { %v808_v12 = vpop.xlane.xlu0 %807 }
 0x324   :  { %v826_v20 = vsub.f32 %v794_v41, %v808_v12 }
 0x326   :  { %v836_v21 = vmul.f32 1.442695, %v826_v20 }
 0x327   :  { %v814_v22 = vpop.xlane.xlu1 %813  ;;  %v811_v23 = vpop.xlane.xlu0 %810 }
 0x328   :  { %2291 = vpow2.f32 %v836_v21  ;;  %v828_v24 = vsub.f32 %v796_v50, %v814_v22  ;;  %v827_v25 = vsub.f32 %v795_v49, %v811_v23 }
 0x32a   :  { %v840_v26 = vmul.f32 1.442695, %v828_v24  ;;  %v838_v27 = vmul.f32 1.442695, %v827_v25  ;;  %v1531_v24 = vld [vmem:[%s2886_s4 + $0x18] sm:$0xff]  ;;  %v1529_v25 = vld [vmem:[%s2886_s4 + $0x8] sm:$0xff] }
 0x32b   :  { %v820_v28 = vpop.xlane.xlu1 %819  ;;  %v817_v29 = vpop.xlane.xlu0 %816 }
 0x32c   :  { %2293 = vpow2.f32 %v840_v26  ;;  %v830_v30 = vsub.f32 %v798_v60, %v820_v28  ;;  %v829_v31 = vsub.f32 %v797_v59, %v817_v29 }
 0x32d   :  { %2295 = vpow2.f32 %v838_v27  ;;  %v1528_v27 = vld [vmem:[%s2886_s4] sm:$0xff] }
 0x32e   :  { %v844_v32 = vmul.f32 1.442695, %v830_v30  ;;  %v842_v33 = vmul.f32 1.442695, %v829_v31 }
 0x32f   :  { %v889_v34 = vpop.permute.xlu1 %888  ;;  %v823_v35 = vpop.xlane.xlu0 %822 }
 0x330   :  { %2297 = vpow2.f32 %v844_v32  ;;  %v831_v36 = vsub.f32 %v799_v3, %v823_v35  ;;  %2191 = vmatpush3.msra.mxu0 %v889_v34 }
 0x331   :  { %2299 = vpow2.f32 %v842_v33  ;;  %2200 = vmatprep.subr.mxu0 %v2419_v7 }
 0x332   :  { %v846_v37 = vmul.f32 1.442695, %v831_v36 }
 0x333   :  { %v965_v38 = vpop.permute.xlu0 %964  ;;  %v1041_v51 = vpop.permute.xlu1 %1040 }
 0x334   :  { %2301 = vpow2.f32 %v846_v37  ;;  %2196 = vmatpush3.msra.mxu1 %v965_v38 }
 0x335   :  { %v2292_v39 = vpop.eup %2291  ;;  %2205 = vmatprep.subr.mxu1 %v2419_v7 }
 0x336   :  { %v854_v40 = vsel %vm177_vm2, %v2292_v39, 0.0 }
 0x337   :  { %855 = vadd.xlane.f32.xlu1 %v854_v40  ;;  %v1117_v52 = vpop.permute.xlu1 %1116  ;;  %v1193_v53 = vpop.permute.xlu0 %1192 }
 0x339   :  { %v2294_v41 = vpop.eup %2293 }
 0x33a   :  { %v2296_v42 = vpop.eup %2295  ;;  %v860_v43 = vsel %vm177_vm2, %v2294_v41, 0.0 }
 0x33b   :  { %861 = vadd.xlane.f32.xlu1 %v860_v43  ;;  %v857_v44 = vsel %vm177_vm2, %v2296_v42, 0.0  ;;  %v1269_v54 = vpop.permute.xlu1 %1268 }
 0x33c   :  { %858 = vadd.xlane.f32.xlu0 %v857_v44 }
 0x33d   :  { %v2298_v45 = vpop.eup %2297 }
 0x33e   :  { %v2642_v46 = vpop.eup %2299  ;;  %v866_v47 = vsel %vm177_vm2, %v2298_v45, 0.0 }
 0x33f   :  { %867 = vadd.xlane.f32.xlu1 %v866_v47  ;;  %v863_v48 = vsel %vm177_vm2, %v2642_v46, 0.0 }
 0x340   :  { %864 = vadd.xlane.f32.xlu0 %v863_v48 }
 0x341   :  { %v2647_v49 = vpop.eup %2301 }
 0x342   :  { %v869_v50 = vsel %vm177_vm2, %v2647_v49, 0.0 }
 0x344   :  { %870 = vadd.xlane.f32.xlu0 %v869_v50 }
 0x350   :  { %1420 = vrot.lane.b32.xlu1 %v2557_v17, %s2425_s15 }
 0x35a   :  { %1344 = vrot.lane.b32.xlu0 %v2551_v16, %s2425_s15 }
 0x368   :  { %v853_v55 = vpop.xlane.xlu0 %852 }
 0x369   :  { %2303 = vrcp.f32 %v853_v55 }
 0x36c   :  { %v850_v56 = vpop.xlane.xlu1 %849 }
 0x36d   :  { %2305 = vrcp.f32 %v850_v56 }
 0x376   :  { %v2304_v57 = vpop.eup %2303 }
 0x377   :  { %v2656_v58 = vmul.f32 %v2304_v57, %v2629_v13 }
 0x379   :  { %2198 = vmatmul.mubr.msk.f32.vlgmr.msra.gmra.mxu1 %vm177_vm2, %v2656_v58 }
 0x37a   :  { %v2306_v59 = vpop.eup %2305  ;;  %2206 = vmatpush3.msra.mxu1 %v1117_v52  ;;  %2207 = vmatprep.mubr.msk.f32.mxu1 %vm2422_vm1, %v2419_v7 }
 0x37b   :  { %v2663_v16 = vmul.f32 %v2306_v59, %v2633_v11  ;;  %2215 = vmatprep.subr.mxu1 %v2419_v7 }
 0x37d   :  { %2193 = vmatmul.mubr.msk.f32.vlgmr.msra.gmra.mxu0 %vm177_vm2, %v2663_v16 }
 0x37e   :  { %2201 = vmatpush3.msra.mxu0 %v1041_v51  ;;  %2202 = vmatprep.mubr.msk.f32.mxu0 %vm2422_vm1, %v2419_v7  ;;  %v2066_v51 = vld [vmem:[%s2890_s8] ss:$0 sm:$0xff] }
 0x37f   :  { %2210 = vmatprep.subr.mxu0 %v2419_v7 }
 0x3c0   :  { %v856_v17 = vpop.xlane.xlu1 %855 }
 0x3c1   :  { %2307 = vrcp.f32 %v856_v17 }
 0x3c4   :  { %v862_v60 = vpop.xlane.xlu1 %861 }
 0x3c5   :  { %2309 = vrcp.f32 %v862_v60  ;;  %v859_v61 = vpop.xlane.xlu0 %858 }
 0x3c6   :  { %2311 = vrcp.f32 %v859_v61 }
 0x3c8   :  { %v868_v62 = vpop.xlane.xlu1 %867 }
 0x3c9   :  { %2313 = vrcp.f32 %v868_v62  ;;  %v865_v63 = vpop.xlane.xlu0 %864 }
 0x3ca   :  { %2315 = vrcp.f32 %v865_v63 }
 0x3cc   :  { %v1421_v11 = vpop.permute.xlu1 %1420 }
 0x3cd   :  { %v871_v0 = vpop.xlane.xlu0 %870 }
 0x3ce   :  { %v2308_v1 = vpop.eup %2307  ;;  %2317 = vrcp.f32 %v871_v0 }
 0x3cf   :  { %v2671_v3 = vmul.f32 %v2308_v1, %v2292_v39 }
 0x3d1   :  { %2203 = vmatmul.mubr.msk.f32.vlgmr.msra.gmra.mxu0 %vm177_vm2, %v2671_v3  ;;  %v1345_v18 = vpop.permute.xlu0 %1344 }
 0x3d2   :  { %v2310_v4 = vpop.eup %2309  ;;  %2211 = vmatpush3.msra.mxu0 %v1193_v53  ;;  %2212 = vmatprep.mubr.msk.f32.mxu0 %vm2422_vm1, %v2419_v7 }
 0x3d3   :  { %v2312_v6 = vpop.eup %2311  ;;  %2220 = vmatprep.subr.mxu0 %v2419_v7  ;;  %v2678_v8 = vmul.f32 %v2310_v4, %v2294_v41 }
 0x3d4   :  { %v2680_v9 = vmul.f32 %v2312_v6, %v2296_v42  ;;  %v1664_v6 = vld [vmem:[%s2887_s5 + $0x18] sm:$0xff] }
 0x3d5   :  { %2213 = vmatmul.mubr.msk.f32.vlgmr.msra.gmra.mxu0 %vm177_vm2, %v2678_v8 }
 0x3d6   :  { %v2314_v10 = vpop.eup %2313  ;;  %2208 = vmatmul.mubr.msk.f32.vlgmr.msra.gmra.mxu1 %vm177_vm2, %v2680_v9  ;;  %2221 = vmatpush3.msra.mxu0 %v1345_v18  ;;  %v1662_v18 = vld [vmem:[%s2887_s5 + $0x8] sm:$0xff] }
 0x3d7   :  { %v2316_v19 = vpop.eup %2315  ;;  %2216 = vmatpush3.msra.mxu1 %v1269_v54  ;;  %2217 = vmatprep.mubr.msk.f32.mxu1 %vm2422_vm1, %v2419_v7  ;;  %v2688_v13 = vmul.f32 %v2314_v10, %v2298_v45 }
 0x3d8   :  { %2222 = vmatprep.mubr.msk.f32.mxu0 %vm2422_vm1, %v2419_v7  ;;  %2225 = vmatprep.subr.mxu1 %v2419_v7  ;;  %v2694_v15 = vmul.f32 %v2316_v19, %v2642_v46 }
 0x3d9   :  { %2223 = vmatmul.mubr.msk.f32.vlgmr.msra.gmra.mxu0 %vm177_vm2, %v2688_v13  ;;  %2230 = vmatprep.subr.mxu0 %v1531_v24 }
 0x3da   :  { %2218 = vmatmul.mubr.msk.f32.vlgmr.msra.gmra.mxu1 %vm177_vm2, %v2694_v15  ;;  %2231 = vmatpush3.msra.mxu0 %v1531_v24 }
 0x3db   :  { %v2318_v14 = vpop.eup %2317  ;;  %2226 = vmatpush3.msra.mxu1 %v1421_v11  ;;  %2227 = vmatprep.mubr.msk.f32.mxu1 %vm2422_vm1, %v2419_v7  ;;  %v1530_v7 = vld [vmem:[%s2886_s4 + $0x10] sm:$0xff] }
 0x3dc   :  { %v2703_v12 = vmul.f32 %v2318_v14, %v2647_v49  ;;  %2232 = vmatprep.subr.mxu0 %v1530_v7  ;;  %2241 = vmatprep.subr.mxu1 %v1664_v6 }
 0x3dd   :  { %2233 = vmatpush3.msra.mxu0 %v1530_v7 }
 0x3de   :  { %2228 = vmatmul.mubr.msk.f32.vlgmr.msra.gmra.mxu1 %vm177_vm2, %v2703_v12  ;;  %2234 = vmatprep.subr.mxu0 %v1529_v25 }
 0x3df   :  { %2235 = vmatpush3.msra.mxu0 %v1529_v25  ;;  %2242 = vmatpush3.msra.mxu1 %v1664_v6 }
 0x3e0   :  { %2236 = vmatprep.subr.mxu0 %v1528_v27 }
 0x3e1   :  { %2237 = vmatpush3.msra.mxu0 %v1528_v27 }
 0x439   :  { %v1036_v20 = vpop.f32.mrf.mxu1 }
 0x43b   :  { %v2199_v21 = vpop.f32.mrf.mxu1 }
 0x43d   :  { %v960_v22 = vpop.f32.mrf.mxu0 }
 0x43f   :  { %v2194_v23 = vpop.f32.mrf.mxu0 }
 0x491   :  { %v1112_v26 = vpop.f32.mrf.mxu0 }
 0x492   :  { %1498 = vrot.lane.b32.xlu0 %v1112_v26, %s2417_s17 }
 0x493   :  { %v2204_v28 = vpop.f32.mrf.mxu0 }
 0x495   :  { %v1264_v29 = vpop.f32.mrf.mxu0 }
 0x496   :  { %v1188_v30 = vpop.f32.mrf.mxu1  ;;  %1506 = vrot.lane.b32.xlu0 %v1264_v29, %s2426_s0 }
 0x497   :  { %1500 = vrot.lane.b32.xlu1 %v1188_v30, %s2417_s17  ;;  %v2214_v31 = vpop.f32.mrf.mxu0 }
 0x498   :  { %v2209_v32 = vpop.f32.mrf.mxu1 }
 0x499   :  { %v1416_v33 = vpop.f32.mrf.mxu0 }
 0x49a   :  { %v1340_v34 = vpop.f32.mrf.mxu1  ;;  %1514 = vrot.lane.b32.xlu0 %v1416_v33, %s2427_s25 }
 0x49b   :  { %1508 = vrot.lane.b32.xlu1 %v1340_v34, %s2426_s0  ;;  %v2224_v35 = vpop.f32.mrf.mxu0 }
 0x49c   :  { %v2219_v36 = vpop.f32.mrf.mxu1 }
 0x49e   :  { %v1492_v37 = vpop.f32.mrf.mxu1 }
 0x49f   :  { %1516 = vrot.lane.b32.xlu1 %v1492_v37, %s2427_s25 }
 0x4a0   :  { %v2229_v38 = vpop.f32.mrf.mxu1 }
 0x504   :  { %v1499_v39 = vpop.permute.xlu0 %1498 }
 0x505   :  { %v1520_v42 = vsel %vm177_vm2, %v960_v22, %v1499_v39 }
 0x508   :  { %v1507_v40 = vpop.permute.xlu0 %1506 }
 0x509   :  { %v1501_v41 = vpop.permute.xlu1 %1500  ;;  %v1523_v43 = vsel %vm1522_vm3, %v1520_v42, %v1507_v40 }
 0x50a   :  { %v1521_v47 = vsel %vm177_vm2, %v1036_v20, %v1501_v41 }
 0x50c   :  { %v1515_v44 = vpop.permute.xlu0 %1514 }
 0x50d   :  { %v1509_v45 = vpop.permute.xlu1 %1508  ;;  %v1526_v46 = vsel %vm1525_vm4, %v1523_v43, %v1515_v44 }
 0x50e   :  { %2238 = vmatprep.mubr.msk.f32.mxu0 %vm79_vm0, %v1526_v46  ;;  %v1524_v48 = vsel %vm1522_vm3, %v1521_v47, %v1509_v45 }
 0x511   :  { %v1517_v49 = vpop.permute.xlu1 %1516 }
 0x512   :  { %v1527_v50 = vsel %vm1525_vm4, %v1524_v48, %v1517_v49  ;;  %v2069_v49 = vld [vmem:[%s2890_s8 + $0x1] ss:$0 sm:$0xff] }
 0x513   :  { %2239 = vmatmul.mubr.msk.f32.vlgmr.msra.gmra.mxu0 %vm79_vm0, %v1527_v50 }
 0x5d3   :  { %v2240_v52 = vpop.f32.mrf.mxu0 }
 0x5d4   :  { %v1615_v53 = vadd.f32 %v2240_v52, %v2066_v51 }
 0x5d5   :  { %v1609_v54 = vpop.f32.mrf.mxu0 }
 0x5d6   :  { %v1610_v55 = vadd.f32 %v2066_v51, %v1609_v54  ;;  %v1619_v56 = vadd.f32 %v1615_v53, %v2510_v5  ;;  %v2070_v53 = vld [vmem:[%s2890_s8 + $0x2] ss:$0 sm:$0xff] }
 0x5d8   :  { %v1623_v57 = vsel %vm79_vm0, %v1619_v56, 0.0  ;;  %v1618_v59 = vadd.f32 %v1610_v55, %v2500_v2 }
 0x5d9   :  { %1624 = vadd.xlane.f32.xlu1 %v1623_v57 }
 0x5da   :  { %v1620_v17 = vsel %vm79_vm0, %v1618_v59, 0.0 }
 0x5db   :  { %1621 = vadd.xlane.f32.xlu0 %v1620_v17 }
 0x5ea   :  { %1923 = vrot.lane.b32.xlu1 %v2671_v3, %s2417_s17 }
 0x5ee   :  { %1929 = vrot.lane.b32.xlu1 %v2678_v8, %s2426_s0  ;;  %v1663_v8 = vld [vmem:[%s2887_s5 + $0x10] sm:$0xff] }
 0x5ef   :  { %2243 = vmatprep.subr.mxu1 %v1663_v8 }
 0x5f0   :  { %2244 = vmatpush3.msra.mxu1 %v1663_v8 }
 0x5f1   :  { %2245 = vmatprep.subr.mxu1 %v1662_v18 }
 0x5f2   :  { %1931 = vrot.lane.b32.xlu1 %v2694_v15, %s2426_s0  ;;  %2246 = vmatpush3.msra.mxu1 %v1662_v18 }
 0x5f6   :  { %1937 = vrot.lane.b32.xlu1 %v2703_v12, %s2427_s25 }
 0x662   :  { %v1625_v5 = vpop.xlane.xlu1 %1624 }
 0x663   :  { %v1628_v60 = vmul.f32 0.03125, %v1625_v5  ;;  %v1771_v5 = vld [vmem:[%s2889_s7 + $0x38] sm:$0xff] }
 0x664   :  { %v1622_v61 = vpop.xlane.xlu0 %1621  ;;  %2252 = vmatprep.subr.mxu0 %v1771_v5 }
 0x665   :  { %v1627_v2 = vmul.f32 0.03125, %v1622_v61  ;;  %v2748_v62 = vsub.f32 %v1619_v56, %v1628_v60  ;;  %2253 = vmatpush3.msra.mxu0 %v1771_v5  ;;  %v1770_v60 = vld [vmem:[%s2889_s7 + $0x30] sm:$0xff]  ;;  %v1769_v61 = vld [vmem:[%s2889_s7 + $0x28] sm:$0xff] }
 0x666   :  { %v1924_v10 = vpop.permute.xlu1 %1923  ;;  %2254 = vmatprep.subr.mxu0 %v1770_v60 }
 0x667   :  { %v2750_v63 = vsub.f32 %v1618_v59, %v1627_v2  ;;  %v1632_v3 = vmul.f32 %v2748_v62, %v2748_v62  ;;  %v1941_v25 = vsel %vm177_vm2, %v2663_v16, %v1924_v10  ;;  %2255 = vmatpush3.msra.mxu0 %v1770_v60  ;;  %v1768_v2 = vld [vmem:[%s2889_s7 + $0x20] sm:$0xff] }
 0x668   :  { %2256 = vmatprep.subr.mxu0 %v1769_v61 }
 0x669   :  { %v1631_v0 = vmul.f32 %v2750_v63, %v2750_v63  ;;  %v1636_v4 = vsel %vm79_vm0, %v1632_v3, 0.0  ;;  %2257 = vmatpush3.msra.mxu0 %v1769_v61  ;;  %v2071_v3 = vld [vmem:[%s2888_s6] ss:$0 sm:$0xff] }
 0x66a   :  { %v1930_v19 = vpop.permute.xlu1 %1929  ;;  %2258 = vmatprep.subr.mxu0 %v1768_v2 }
 0x66b   :  { %v1633_v1 = vsel %vm79_vm0, %v1631_v0, 0.0  ;;  %v1943_v27 = vsel %vm1522_vm3, %v1941_v25, %v1930_v19  ;;  %2259 = vmatpush3.msra.mxu0 %v1768_v2  ;;  %v1765_v0 = vld [vmem:[%s2889_s7 + $0x8] sm:$0xff] }
 0x66c   :  { %1634 = vadd.xlane.f32.xlu0 %v1633_v1  ;;  %v1764_v1 = vld [vmem:[%s2889_s7] sm:$0xff] }
 0x66e   :  { %v1932_v14 = vpop.permute.xlu1 %1931 }
 0x670   :  { %1637 = vadd.xlane.f32.xlu0 %v1636_v4 }
 0x672   :  { %v1938_v24 = vpop.permute.xlu1 %1937 }
 0x686   :  { %1925 = vrot.lane.b32.xlu0 %v2680_v9, %s2417_s17  ;;  %v1661_v9 = vld [vmem:[%s2887_s5] sm:$0xff]  ;;  %s2428_s5 = smov 32  }
 0x687   :  { %2247 = vmatprep.subr.mxu1 %v1661_v9 }
 0x688   :  { %2248 = vmatpush3.msra.mxu1 %v1661_v9 }
 0x68a   :  { %1935 = vrot.lane.b32.xlu0 %v2688_v13, %s2427_s25 }
 0x6f5   :  { %v1635_v13 = vpop.xlane.xlu0 %1634 }
 0x6f6   :  { %v1639_v15 = vmul.f32 0.03125, %v1635_v13 }
 0x6f8   :  { %v1641_v11 = vadd.f32 1e-05, %v1639_v15 }
 0x6f9   :  { %v1638_v12 = vpop.xlane.xlu0 %1637 }
 0x6fa   :  { %2319 = vrsqrt.f32 %v1641_v11  ;;  %v1640_v20 = vmul.f32 0.03125, %v1638_v12 }
 0x6fc   :  { %v1642_v21 = vadd.f32 1e-05, %v1640_v20 }
 0x6fd   :  { %v1926_v22 = vpop.permute.xlu0 %1925 }
 0x6fe   :  { %2321 = vrsqrt.f32 %v1642_v21  ;;  %v1942_v23 = vsel %vm177_vm2, %v2656_v58, %v1926_v22  ;;  %v2074_v22 = vld [vmem:[%s2890_s8 + $0x3] ss:$0 sm:$0xff]  ;;  %s2429_s8 = smov [#allocation7]  }
 0x6ff   :  { %v1944_v7 = vsel %vm1522_vm3, %v1942_v23, %v1932_v14 }
 0x700   :  { %v1946_v26 = vsel %vm1525_vm4, %v1944_v7, %v1938_v24 }
 0x701   :  { %v1936_v28 = vpop.permute.xlu0 %1935  ;;  %v1974_v30 = vrot.slane %v1946_v26, 4  ;;  %v1970_v31 = vrot.slane %v1946_v26, 3  ;;  %v1949_v32 = vrot.slane %v1946_v26, 7  ;;  %v1986_v58 = vrot.slane %v1946_v26, 6 }
 0x702   :  { %v1945_v29 = vsel %vm1525_vm4, %v1943_v27, %v1936_v28  ;;  %v1964_v35 = vrot.slane %v1946_v26, 2  ;;  %v1980_v47 = vrot.slane %v1946_v26, 5  ;;  %v1958_v48 = vrot.slane %v1946_v26, 1 }
 0x703   :  { %v1973_v33 = vrot.slane %v1945_v29, 5  ;;  %v1952_v34 = vrot.slane %v1945_v29, 1  ;;  %v1969_v36 = vrot.slane %v1945_v29, 4  ;;  %v2783_v37 = vsel %vm1862_vm5, %v1949_v32, %v1945_v29 }
 0x704   :  { %v1985_v16 = vrot.slane %v1945_v29, 7  ;;  %v1963_v38 = vrot.slane %v1945_v29, 3  ;;  %v1979_v41 = vrot.slane %v1945_v29, 6  ;;  %v1957_v42 = vrot.slane %v1945_v29, 2 }
 0x705   :  { %v1975_v39 = vsel %vm1862_vm5, %v1974_v30, %v1973_v33  ;;  %v1953_v40 = vsel %vm1862_vm5, %v1946_v26, %v1952_v34  ;;  %v2790_v43 = vsel %vm1862_vm5, %v1970_v31, %v1969_v36 }
 0x706   :  { %1976 = vrot.lane.b32.xlu1 %v1975_v39, %s2428_s5  ;;  %1954 = vrot.lane.b32.xlu0 %v1953_v40, %s2428_s5  ;;  %v2793_v44 = vsel %vm1862_vm5, %v1986_v58, %v1985_v16  ;;  %v2796_v45 = vsel %vm1862_vm5, %v1964_v35, %v1963_v38  ;;  %v1981_v51 = vsel %vm1862_vm5, %v1980_v47, %v1979_v41 }
 0x707   :  { %v2320_v46 = vpop.eup %2319  ;;  %v1959_v52 = vsel %vm1862_vm5, %v1958_v48, %v1957_v42 }
 0x708   :  { %v1645_v50 = vmul.f32 %v2320_v46, %v2750_v63  ;;  %v1766_v63 = vld [vmem:[%s2889_s7 + $0x10] sm:$0xff] }
 0x70a   :  { %1982 = vrot.lane.b32.xlu1 %v1981_v51, %s2425_s15  ;;  %1960 = vrot.lane.b32.xlu0 %v1959_v52, %s2425_s15  ;;  %v1652_v54 = vmul.f32 %v2069_v49, %v1645_v50 }
 0x70b   :  { %v2322_v55 = vpop.eup %2321 }
 0x70c   :  { %v1646_v56 = vmul.f32 %v2322_v55, %v2748_v62  ;;  %v1659_v57 = vadd.f32 %v2070_v53, %v1652_v54  ;;  %v1767_v62 = vld [vmem:[%s2889_s7 + $0x18] sm:$0xff] }
 0x70d   :  { %2260 = vmatprep.subr.mxu0 %v1767_v62 }
 0x70e   :  { %v1653_v59 = vmul.f32 %v2069_v49, %v1646_v56  ;;  %2249 = vmatprep.mubr.msk.f32.mxu1 %vm79_vm0, %v1659_v57  ;;  %2261 = vmatpush3.msra.mxu0 %v1767_v62 }
 0x70f   :  { %2262 = vmatprep.subr.mxu0 %v1766_v63 }
 0x710   :  { %v1660_v17 = vadd.f32 %v2070_v53, %v1653_v59  ;;  %2263 = vmatpush3.msra.mxu0 %v1766_v63 }
 0x711   :  { %2264 = vmatprep.subr.mxu0 %v1765_v0 }
 0x712   :  { %2250 = vmatmul.mubr.msk.f32.vlgmr.msra.gmra.mxu1 %vm79_vm0, %v1660_v17  ;;  %2265 = vmatpush3.msra.mxu0 %v1765_v0 }
 0x713   :  { %2266 = vmatprep.subr.mxu0 %v1764_v1 }
 0x714   :  { %2267 = vmatpush3.msra.mxu0 %v1764_v1 }
 0x778   :  { %v1977_v50 = vpop.permute.xlu1 %1976  ;;  %v1955_v51 = vpop.permute.xlu0 %1954 }
 0x779   :  { %v1994_v63 = vsel %vm79_vm0, %v2790_v43, %v1977_v50  ;;  %v1991_v0 = vsel %vm79_vm0, %v2783_v37, %v1955_v51 }
 0x77c   :  { %v1983_v52 = vpop.permute.xlu1 %1982  ;;  %v1961_v53 = vpop.permute.xlu0 %1960 }
 0x77d   :  { %v1995_v1 = vsel %vm1777_vm6, %v1994_v63, %v1983_v52 }
 0x7d2   :  { %v2251_v4 = vpop.f32.mrf.mxu1 }
 0x7d3   :  { %v1750_v6 = vadd.f32 %v2251_v4, %v2071_v3 }
 0x7d4   :  { %v1744_v8 = vpop.f32.mrf.mxu1 }
 0x7d5   :  { %v1757_v18 = vmul.f32 0.70710677, %v1750_v6  ;;  %v1745_v9 = vadd.f32 %v2071_v3, %v1744_v8  ;;  %v1754_v12 = vmul.f32 0.5, %v1750_v6  ;;  %v1992_v3 = vsel %vm1777_vm6, %v1991_v0, %v1961_v53 }
 0x7d7   :  { %2323 = verf.f32 %v1757_v18  ;;  %v1756_v10 = vmul.f32 0.70710677, %v1745_v9  ;;  %v1753_v11 = vmul.f32 0.5, %v1745_v9 }
 0x7d9   :  { %2325 = verf.f32 %v1756_v10 }
 0x7e4   :  { %v2324_v19 = vpop.eup %2323 }
 0x7e5   :  { %v1761_v15 = vadd.f32 1.0, %v2324_v19 }
 0x7e6   :  { %v2326_v13 = vpop.eup %2325 }
 0x7e7   :  { %v1760_v14 = vadd.f32 1.0, %v2326_v13  ;;  %v1763_v21 = vmul.f32 %v1761_v15, %v1754_v12 }
 0x7e9   :  { %v1762_v20 = vmul.f32 %v1760_v14, %v1753_v11 }
 0x7eb   :  { %2268 = vmatprep.mubr.msk.f32.mxu0 %vm1777_vm6, %v1762_v20 }
 0x7ec   :  { %2269 = vmatmul.mubr.msk.f32.vlgmr.msra.gmra.mxu0 %vm1777_vm6, %v1763_v21 }
 0x8ac   :  { %v2270_v23 = vpop.f32.mrf.mxu0 }
 0x8ad   :  { %v1856_v24 = vadd.f32 %v2270_v23, %v2074_v22 }
 0x8ae   :  { %v1850_v7 = vpop.f32.mrf.mxu0 }
 0x8af   :  { %v1851_v25 = vadd.f32 %v2074_v22, %v1850_v7  ;;  %v1861_v26 = vrot.slane %v1856_v24, 7  ;;  %v1887_v28 = vrot.slane %v1856_v24, 4  ;;  %v1883_v31 = vrot.slane %v1856_v24, 3 }
 0x8b0   :  { %v1893_v16 = vrot.slane %v1856_v24, 5  ;;  %v1871_v38 = vrot.slane %v1856_v24, 1  ;;  %v1899_v46 = vrot.slane %v1856_v24, 6  ;;  %v1877_v47 = vrot.slane %v1856_v24, 2 }
 0x8b1   :  { %v1886_v27 = vrot.slane %v1851_v25, 5  ;;  %v1865_v29 = vrot.slane %v1851_v25, 1  ;;  %v1882_v30 = vrot.slane %v1851_v25, 4  ;;  %v1863_v32 = vsel %vm1862_vm5, %v1861_v26, %v1851_v25 }
 0x8b2   :  { %v1892_v58 = vrot.slane %v1851_v25, 6  ;;  %v1870_v35 = vrot.slane %v1851_v25, 2  ;;  %v1898_v41 = vrot.slane %v1851_v25, 7  ;;  %v1876_v42 = vrot.slane %v1851_v25, 3 }
 0x8b3   :  { %v1888_v33 = vsel %vm1862_vm5, %v1887_v28, %v1886_v27  ;;  %v1866_v34 = vsel %vm1862_vm5, %v1856_v24, %v1865_v29  ;;  %v1884_v36 = vsel %vm1862_vm5, %v1883_v31, %v1882_v30 }
 0x8b4   :  { %1889 = vrot.lane.b32.xlu1 %v1888_v33, %s2428_s5  ;;  %1867 = vrot.lane.b32.xlu0 %v1866_v34, %s2428_s5  ;;  %v1894_v39 = vsel %vm1862_vm5, %v1893_v16, %v1892_v58  ;;  %v1872_v40 = vsel %vm1862_vm5, %v1871_v38, %v1870_v35  ;;  %v1900_v48 = vsel %vm1862_vm5, %v1899_v46, %v1898_v41 }
 0x8b5   :  { %v1878_v49 = vsel %vm1862_vm5, %v1877_v47, %v1876_v42 }
 0x8b8   :  { %1895 = vrot.lane.b32.xlu1 %v1894_v39, %s2425_s15  ;;  %1873 = vrot.lane.b32.xlu0 %v1872_v40, %s2425_s15  ;;  %s2015_s15 = sshll.u32 %s2429_s8, 4  ;;  %s2016_s15 = int_to_ptr.vmem [resolvable:$true] %s2015_s15 }
 0x8b9   :  { %s2367_s5 = scalar_lea.vmem %s2016_s15, 64  ;;  %p2372_p11 = scmp.lt.s32.totalorder %s2016_s15, %s2016_s15 }
 0x8ba   :  { %p2368_p10 = scmp.ne.s32.totalorder %s2016_s15, %s2367_s5  ;;  %p2373_p12 = scmp.lt.s32.totalorder %s2367_s5, %s2367_s5 }
 0x8bc   :  { %1901 = vrot.lane.b32.xlu1 %v1900_v48, %s2424_s14  ;;  %1879 = vrot.lane.b32.xlu0 %v1878_v49, %s2424_s14  ;;  %p2374_p13 = por %p2373_p12, %p2372_p11 }
 0x8be   :  { %p2375_p0 = pnand %p2374_p13, %p2368_p10 }
 0x8c0   :  { %1988 = vrot.lane.b32.xlu1 %v2793_v44, %s2424_s14  ;;  %1966 = vrot.lane.b32.xlu0 %v2796_v45, %s2424_s14  ;;  %s2430_s14 = smov [#allocation8]  }
 0x8c1   :  { %s2025_s12 = sshll.u32 %s2430_s14, 4  ;;  %s2026_s12 = int_to_ptr.vmem [resolvable:$true] %s2025_s12 }
 0x926   :  { %v1890_v54 = vpop.permute.xlu1 %1889  ;;  %v1868_v55 = vpop.permute.xlu0 %1867 }
 0x927   :  { %v1908_v59 = vsel %vm79_vm0, %v1884_v36, %v1890_v54  ;;  %v1904_v17 = vsel %vm79_vm0, %v1863_v32, %v1868_v55 }
 0x92a   :  { %v1896_v56 = vpop.permute.xlu1 %1895  ;;  %v1874_v57 = vpop.permute.xlu0 %1873 }
 0x92b   :  { %v1909_v44 = vsel %vm1777_vm6, %v1908_v59, %v1896_v56  ;;  %v1905_v5 = vsel %vm1777_vm6, %v1904_v17, %v1874_v57 }
 0x92e   :  { %v1902_v45 = vpop.permute.xlu1 %1901  ;;  %v1880_v60 = vpop.permute.xlu0 %1879 }
 0x92f   :  { %v1910_v61 = vsel %vm1906_vm7, %v1909_v44, %v1902_v45  ;;  %v1907_v2 = vsel %vm1906_vm7, %v1905_v5, %v1880_v60 }
 0x930   :  { %v1913_v62 = vcombine.low %v1907_v2, %v1910_v61 }
 0x932   :  { %2077 = vst.sshfl [vmem:[#allocation7] sm:$0x33 pattern:$0x76325410] %v1913_v62  ;;  %v1989_v4 = vpop.permute.xlu1 %1988  ;;  %v1967_v6 = vpop.permute.xlu0 %1966 }
 0x933   :  { %v1996_v8 = vsel %vm1906_vm7, %v1995_v1, %v1989_v4  ;;  %v1993_v18 = vsel %vm1906_vm7, %v1992_v3, %v1967_v6 }
 0x934   :  { %2378 = shalt.err (!%p2375_p0)
}
 0x935   :  { %2018 = dma.vmem_to_hbm [thread:$0]  %s2016_s15, 64, %s2891_s9, [#allocation4]   ;;  %v1999_v37 = vcombine.low %v1993_v18, %v1996_v8 }
 0x936   :  { %s2387_s3 = scalar_lea.vmem %s2026_s12, 64  ;;  %p2392_p2 = scmp.lt.s32.totalorder %s2026_s12, %s2026_s12 }
 0x937   :  { %2078 = vst.sshfl [vmem:[#allocation8] sm:$0x33 pattern:$0x76325410] %v1999_v37  ;;  %p2388_p1 = scmp.ne.s32.totalorder %s2026_s12, %s2387_s3  ;;  %p2393_p3 = scmp.lt.s32.totalorder %s2387_s3, %s2387_s3 }
 0x939   :  { %p2394_p4 = por %p2393_p3, %p2392_p2 }
 0x93b   :  { %p2395_p5 = pnand %p2394_p4, %p2388_p1 }
 0x93d   :  { %2398 = shalt.err (!%p2395_p5)
}
 0x93e   :  { %2028 = dma.vmem_to_hbm [thread:$0]  %s2026_s12, 64, %s2892_s10, [#allocation9]  }
 0x93f   :  { %2411 = dma.done.wait [#allocation4], 64  }
 0x940   :  { %2412 = vsyncadd [#allocation4], 4294967232 }
 0x941   :  { %2413 = dma.done.wait [#allocation9], 64  }
 0x942   :  { %2414 = vsyncadd [#allocation9], 4294967232 }
 0x943   :  { %2035 = vsyncpa [#allocation3], 1 }
 0x944   :  { %2036 = vsyncpa [#allocation6], 1 }
 0x945   :  { %2037 = vsyncpa [#allocation4], 1 }
 0x946   :  { %2038 = vsyncpa [#allocation9], 1 }

</bundles_post_ra>
